<compile_context>
chip_gen: v7x
topology: tpu7x:2x2x1
jax: 0.10.0
libtpu: 0.0.40
codegen_flags: <defaults>
</compile_context>

<pallas_src>
import functools

import jax
import jax.numpy as jnp
from jax.experimental import pallas as pl
from jax.experimental.pallas import tpu as pltpu

EPS = 1e-6
NUM_GROUPS = 32


# --------------------------------------------------------------------------------------
# Generation-aware VMEM budgets and row-tile pickers.
# --------------------------------------------------------------------------------------
@functools.lru_cache(maxsize=None)
def _vmem_config():
    """(vmem_limit_bytes, conv per-step budget, stats per-step budget)."""
    cap = 64 * 1024 * 1024
    try:
        cap = int(getattr(pltpu.get_tpu_info(), "vmem_capacity_bytes", cap))
    except Exception:
        pass  # conservative (v7x-sized) fallback below
    if cap >= 100 * 1024 * 1024:           # v5e / v6e: 128 MiB physical VMEM
        return 96 * 1024 * 1024, 20 * 1024 * 1024, 12 * 1024 * 1024
    return 44 * 1024 * 1024, 10 * 1024 * 1024, 8 * 1024 * 1024    # v7x: 64 MiB / TC


def _pick_conv_row_tile(H, W, cin, cout, budget, in_bytes):
    """Largest TH dividing H whose per-step working set fits `budget`.

    Counts double-buffered input/output/shortcut blocks, halo rows, the fp32 activated
    slabs + their bf16 copies, the bf16 im2col patch, the fp32 MXU result and weights.
    """
    best = 1
    for th in range(1, H + 1):
        if H % th:
            continue
        foot = (2 * th * W * cin * in_bytes          # main input block (double-buffered)
                + 2 * th * W * cin * in_bytes        # conv2 shortcut block (worst case)
                + 4 * W * cin * in_bytes             # halo rows (double-buffered)
                + 2 * th * W * cout * 4              # output block (double-buffered)
                + 3 * (th + 2) * W * cin * 4         # fp32 activated slab + L/R shifts
                + 3 * (th + 2) * W * cin * 2         # bf16 copies of the slabs
                + th * W * 9 * cin * 2               # bf16 im2col patch
                + th * W * cout * 4                  # fp32 MXU result
                + 9 * cin * cout * 2)                # bf16 weights
        if foot <= budget:
            best = th
    return best


def _pick_stats_row_tile(H, W, C, budget, in_bytes):
    best = 1
    for th in range(1, H + 1):
        if H % th == 0 and 2 * th * W * C * in_bytes + 8 * C <= budget:
            best = th
    return best


# --------------------------------------------------------------------------------------
# Streaming per-channel sum / sum-of-squares (for GroupNorm 1).  Grid = (N, H//TH),
# the row axis is an "arbitrary" reduction with VMEM accumulators.
# --------------------------------------------------------------------------------------
def _chan_stats_kernel(x_ref, sum_ref, ssq_ref, sacc, qacc):
    i = pl.program_id(1)
    _, TH, W, C = x_ref.shape
    x = x_ref[...].astype(jnp.float32).reshape(TH * W, C)

    @pl.when(i == 0)
    def _init():
        sacc[...] = jnp.zeros_like(sacc)
        qacc[...] = jnp.zeros_like(qacc)

    sacc[...] += jnp.sum(x, axis=0, keepdims=True)        # (1, C)
    qacc[...] += jnp.sum(x * x, axis=0, keepdims=True)    # (1, C)

    @pl.when(i == pl.num_programs(1) - 1)
    def _finalize():
        sum_ref[...] = sacc[...].reshape(1, 1, C)
        ssq_ref[...] = qacc[...].reshape(1, 1, C)


def channel_sums(x, th, vmem_limit):
    N, H, W, C = x.shape
    cost = pl.CostEstimate(flops=3 * N * H * W * C, transcendentals=0,
                           bytes_accessed=N * H * W * C * x.dtype.itemsize + 2 * N * C * 4)
    return pl.pallas_call(
        _chan_stats_kernel,
        out_shape=(jax.ShapeDtypeStruct((N, 1, C), jnp.float32),
                   jax.ShapeDtypeStruct((N, 1, C), jnp.float32)),
        grid=(N, H // th),
        in_specs=[pl.BlockSpec((1, th, W, C), lambda n, i: (n, i, 0, 0))],
        out_specs=(pl.BlockSpec((1, 1, C), lambda n, i: (n, 0, 0)),
                   pl.BlockSpec((1, 1, C), lambda n, i: (n, 0, 0))),
        scratch_shapes=[pltpu.VMEM((1, C), jnp.float32),
                        pltpu.VMEM((1, C), jnp.float32)],
        compiler_params=pltpu.CompilerParams(
            dimension_semantics=("parallel", "arbitrary"),
            vmem_limit_bytes=vmem_limit),
        cost_estimate=cost,
    )(x)


def _gn_affine_from_sums(sum_c, ssq_c, gamma, beta, spatial_count):
    """Per-(sample, channel) a/b so GN(x) == x * a + b, from per-channel sums."""
    N, _, C = sum_c.shape
    G = NUM_GROUPS
    cg = C // G
    cnt = float(spatial_count * cg)
    sum_g = sum_c.reshape(N, G, cg).sum(axis=-1, keepdims=True)
    ssq_g = ssq_c.reshape(N, G, cg).sum(axis=-1, keepdims=True)
    mean = sum_g / cnt
    # NOTE: single-pass E[x^2]-E[x]^2 in fp32; fine for unit-scale activations.
    # TODO(synk): shifted / Welford accumulation if |mean| >> std at large H*W.
    var = jnp.maximum(ssq_g / cnt - mean * mean, 0.0)
    inv = jax.lax.rsqrt(var + EPS)
    mean_c = jnp.broadcast_to(mean, (N, G, cg)).reshape(N, 1, C)
    inv_c = jnp.broadcast_to(inv, (N, G, cg)).reshape(N, 1, C)
    a = gamma.reshape(1, 1, C) * inv_c
    b = beta.reshape(1, 1, C) - mean_c * a
    return a, b


# --------------------------------------------------------------------------------------
# Shared fused GN-affine + swish + 3x3 SAME-conv contraction for one (TH, W) row tile.
# top/bot are 1-row halo blocks of the same array; at sample borders they are zeroed
# *after* the nonlinearity (matching SAME zero padding applied post-activation).
# --------------------------------------------------------------------------------------
def _gn_swish_conv_taps(top_ref, x_ref, bot_ref, a_ref, b_ref, w_ref):
    _, TH, W, C = x_ref.shape
    Cout = w_ref.shape[-1]
    i = pl.program_id(1)
    last = pl.num_programs(1) - 1

    a = a_ref[...].reshape(1, 1, C)
    b = b_ref[...].reshape(1, 1, C)

    def act(v):                                   # fp32 GN-affine + swish
        v = v.astype(jnp.float32) * a + b
        return v * jax.nn.sigmoid(v)

    top = jnp.where(i > 0, act(top_ref[...].reshape(1, W, C)), 0.0)
    mid = act(x_ref[...].reshape(TH, W, C))
    bot = jnp.where(i < last, act(bot_ref[...].reshape(1, W, C)), 0.0)
    hf = jnp.concatenate([top, mid, bot], axis=0)            # (TH+2, W, C) fp32

    # dx-shifted slabs: one concat each (no padded (W+2) intermediate + 3 strided
    # slices).  pltpu.roll(hf, +/-1, axis=1) + iota mask is the XLU-slot alternative.
    zcol = jnp.zeros((TH + 2, 1, C), jnp.float32)
    left = jnp.concatenate([zcol, hf[:, :W - 1, :]], axis=1)   # value at col w = hf[w-1]
    right = jnp.concatenate([hf[:, 1:, :], zcol], axis=1)      # value at col w = hf[w+1]
    slabs = (left.astype(jnp.bfloat16), hf.astype(jnp.bfloat16),
             right.astype(jnp.bfloat16))                        # kw = 0, 1, 2

    if C % 128 == 0:
        # im2col: single MXU contraction with K = 9*C (MXU accumulates internally,
        # no VPU tap adds, one push/pop instead of nine).
        patch = jnp.concatenate(
            [slabs[kw][kh:kh + TH].reshape(TH * W, C)
             for kh in range(3) for kw in range(3)], axis=-1)   # (TH*W, 9*C) bf16
        return jnp.dot(patch, w_ref[...], preferred_element_type=jnp.float32)

    # Lane-unaligned channel widths (C < 128): proven 9-dot fallback.
    acc = jnp.zeros((TH * W, Cout), jnp.float32)
    for kh in range(3):
        for kw in range(3):
            tap = slabs[kw][kh:kh + TH].reshape(TH * W, C)
            wk = w_ref[(kh * 3 + kw) * C:(kh * 3 + kw + 1) * C, :]
            acc += jnp.dot(tap, wk, preferred_element_type=jnp.float32)
    return acc


# --------------------------------------------------------------------------------------
# Fused kernel 1: swish(GN1(x)) -> conv1(3x3) -> + (temb_proj + temb_b + conv1_b).
# Emits bf16 h1 plus per-tile partial sum / sum-of-squares for GN2 (stats fusion).
# --------------------------------------------------------------------------------------
def _conv1_kernel(top_ref, x_ref, bot_ref, a_ref, b_ref, w_ref, tb_ref,
                  o_ref, psum_ref, pssq_ref):
    _, TH, W, _ = x_ref.shape
    Cout = w_ref.shape[-1]
    acc = _gn_swish_conv_taps(top_ref, x_ref, bot_ref, a_ref, b_ref, w_ref)
    acc = acc + tb_ref[...].reshape(1, Cout)
    h1 = acc.astype(jnp.bfloat16)
    o_ref[...] = h1.reshape(1, TH, W, Cout)
    hf = h1.astype(jnp.float32)                    # GN2 stats on the stored bf16 values
    psum_ref[...] = jnp.sum(hf, axis=0, keepdims=True).reshape(1, 1, 1, Cout)
    pssq_ref[...] = jnp.sum(hf * hf, axis=0, keepdims=True).reshape(1, 1, 1, Cout)


def fused_gn_swish_conv1(x, a, b, w_hwio, tbias, th, vmem_limit):
    N, H, W, Cin = x.shape
    Cout = w_hwio.shape[-1]
    nT = H // th
    w2d = w_hwio.reshape(9 * Cin, Cout).astype(jnp.bfloat16)
    cost = pl.CostEstimate(
        flops=2 * N * H * W * 9 * Cin * Cout,
        transcendentals=2 * N * H * W * Cin,
        bytes_accessed=N * H * W * (Cin * x.dtype.itemsize + Cout * 2) + int(w2d.size) * 2)
    # TODO(synk): on v7x with N==1 put the row axis first so both TensorCores shard it.
    return pl.pallas_call(
        _conv1_kernel,
        out_shape=(jax.ShapeDtypeStruct((N, H, W, Cout), jnp.bfloat16),
                   jax.ShapeDtypeStruct((N, nT, 1, Cout), jnp.float32),
                   jax.ShapeDtypeStruct((N, nT, 1, Cout), jnp.float32)),
        grid=(N, nT),
        in_specs=[
            pl.BlockSpec((1, 1, W, Cin),
                         lambda n, i: (n, jnp.maximum(i * th - 1, 0), 0, 0)),
            pl.BlockSpec((1, th, W, Cin), lambda n, i: (n, i, 0, 0)),
            pl.BlockSpec((1, 1, W, Cin),
                         lambda n, i: (n, jnp.minimum(i * th + th, H - 1), 0, 0)),
            pl.BlockSpec((1, 1, Cin), lambda n, i: (n, 0, 0)),
            pl.BlockSpec((1, 1, Cin), lambda n, i: (n, 0, 0)),
            pl.BlockSpec((9 * Cin, Cout), lambda n, i: (0, 0)),
            pl.BlockSpec((1, 1, Cout), lambda n, i: (n, 0, 0)),
        ],
        out_specs=(
            pl.BlockSpec((1, th, W, Cout), lambda n, i: (n, i, 0, 0)),
            pl.BlockSpec((1, 1, 1, Cout), lambda n, i: (n, i, 0, 0)),
            pl.BlockSpec((1, 1, 1, Cout), lambda n, i: (n, i, 0, 0)),
        ),
        compiler_params=pltpu.CompilerParams(
            dimension_semantics=("parallel", "parallel"),
            vmem_limit_bytes=vmem_limit),
        cost_estimate=cost,
    )(x, x, x, a, b, w2d, tbias)


# --------------------------------------------------------------------------------------
# Fused kernel 2: swish(GN2(h1)) -> conv2(3x3) -> + bias(+nin_b) -> + shortcut(x).
# Identity shortcut (Cin == Cout) skips the 1x1 matmul entirely at trace time.
# --------------------------------------------------------------------------------------
def _make_conv2_kernel(has_nin):
    if has_nin:
        def kernel(top_ref, h_ref, bot_ref, a_ref, b_ref, w_ref, bias_ref,
                   x_ref, wn_ref, o_ref):
            _, TH, W, _ = h_ref.shape
            Cin = x_ref.shape[-1]
            Cout = w_ref.shape[-1]
            acc = _gn_swish_conv_taps(top_ref, h_ref, bot_ref, a_ref, b_ref, w_ref)
            xs = x_ref[...].reshape(TH * W, Cin).astype(jnp.bfloat16)
            acc = acc + jnp.dot(xs, wn_ref[...], preferred_element_type=jnp.float32)
            o_ref[...] = (acc + bias_ref[...]).reshape(1, TH, W, Cout).astype(o_ref.dtype)
    else:
        def kernel(top_ref, h_ref, bot_ref, a_ref, b_ref, w_ref, bias_ref,
                   x_ref, o_ref):
            _, TH, W, _ = h_ref.shape
            Cout = w_ref.shape[-1]
            acc = _gn_swish_conv_taps(top_ref, h_ref, bot_ref, a_ref, b_ref, w_ref)
            sc = x_ref[...].reshape(TH * W, Cout).astype(jnp.float32)
            o_ref[...] = (acc + bias_ref[...] + sc).reshape(1, TH, W, Cout).astype(o_ref.dtype)
    return kernel


def fused_gn_swish_conv2_residual(h, a, b, w_hwio, conv_bias, x, nin_w, nin_b,
                                  th, vmem_limit):
    N, H, W, Cmid = h.shape
    Cin = x.shape[-1]
    Cout = w_hwio.shape[-1]
    has_nin = nin_w is not None
    w2d = w_hwio.reshape(9 * Cmid, Cout).astype(jnp.bfloat16)
    bias = conv_bias + (nin_b if has_nin else 0.0)   # fold nin bias into the conv bias

    in_specs = [
        pl.BlockSpec((1, 1, W, Cmid),
                     lambda n, i: (n, jnp.maximum(i * th - 1, 0), 0, 0)),
        pl.BlockSpec((1, th, W, Cmid), lambda n, i: (n, i, 0, 0)),
        pl.BlockSpec((1, 1, W, Cmid),
                     lambda n, i: (n, jnp.minimum(i * th + th, H - 1), 0, 0)),
        pl.BlockSpec((1, 1, Cmid), lambda n, i: (n, 0, 0)),
        pl.BlockSpec((1, 1, Cmid), lambda n, i: (n, 0, 0)),
        pl.BlockSpec((9 * Cmid, Cout), lambda n, i: (0, 0)),
        pl.BlockSpec((1, Cout), lambda n, i: (0, 0)),
        pl.BlockSpec((1, th, W, Cin), lambda n, i: (n, i, 0, 0)),
    ]
    args = [h, h, h, a, b, w2d, bias.reshape(1, Cout), x]
    flops = 2 * N * H * W * 9 * Cmid * Cout
    if has_nin:
        in_specs.append(pl.BlockSpec((Cin, Cout), lambda n, i: (0, 0)))
        args.append(nin_w.astype(jnp.bfloat16))
        flops += 2 * N * H * W * Cin * Cout
    cost = pl.CostEstimate(
        flops=flops, transcendentals=2 * N * H * W * Cmid,
        bytes_accessed=N * H * W * (Cmid * 2 + Cin * x.dtype.itemsize + Cout * 4)
                       + int(w2d.size) * 2)
    return pl.pallas_call(
        _make_conv2_kernel(has_nin),
        out_shape=jax.ShapeDtypeStruct((N, H, W, Cout), x.dtype),
        grid=(N, H // th),
        in_specs=in_specs,
        out_specs=pl.BlockSpec((1, th, W, Cout), lambda n, i: (n, i, 0, 0)),
        compiler_params=pltpu.CompilerParams(
            dimension_semantics=("parallel", "parallel"),
            vmem_limit_bytes=vmem_limit),
        cost_estimate=cost,
    )(*args)


# --------------------------------------------------------------------------------------
# Forward (NHWC core + NCHW wrapper matching the PyTorch module) and parameter init.
# --------------------------------------------------------------------------------------
def resnet_block_forward_nhwc(x, temb, params, row_tile=None):
    N, H, W, Cin = x.shape
    Cout = params["conv1_w"].shape[-1]
    assert Cin % NUM_GROUPS == 0 and Cout % NUM_GROUPS == 0, \
        "GroupNorm(32) needs channel counts divisible by 32 (contiguous groups)"
    vmem_limit, conv_budget, stats_budget = _vmem_config()
    xbytes = x.dtype.itemsize
    if row_tile is not None:
        assert H % row_tile == 0
        th = th_stats = row_tile
    else:
        th = _pick_conv_row_tile(H, W, max(Cin, Cout), Cout, conv_budget, max(xbytes, 2))
        th_stats = _pick_stats_row_tile(H, W, Cin, stats_budget, xbytes)
    # TODO(synk): fold N into the matmul M dimension when H*W is tiny (M = TH*W < 256).

    # GN1: streaming per-channel sums over x; group reduce + affine coeffs in plain jnp.
    s1, q1 = channel_sums(x, th_stats, vmem_limit)
    a1, b1 = _gn_affine_from_sums(s1, q1, params["norm1_g"], params["norm1_b"], H * W)

    # temb projection + temb bias + conv1 bias hoisted out of the conv kernel.
    t = temb.astype(jnp.float32)
    t = t * jax.nn.sigmoid(t)
    tbias = (jnp.dot(t, params["temb_w"]) + params["temb_b"]
             + params["conv1_b"]).reshape(N, 1, Cout)

    # Conv1 also emits the per-tile partial sums needed for GN2 (no extra h1 pass).
    h1, ps, qs = fused_gn_swish_conv1(x, a1, b1, params["conv1_w"], tbias, th, vmem_limit)
    a2, b2 = _gn_affine_from_sums(ps.sum(axis=1), qs.sum(axis=1),
                                  params["norm2_g"], params["norm2_b"], H * W)

    # torch.nn.Dropout is identity in eval(); treated as inference here.
    # TODO(synk): training-mode dropout (pltpu.prng_random_bits mask + 1/(1-p) scale).
    out = fused_gn_swish_conv2_residual(
        h1, a2, b2, params["conv2_w"], params["conv2_b"],
        x, params.get("nin_w"), params.get("nin_b"), th, vmem_limit)
    # TODO(synk): use_conv_shortcut=True (3x3 conv shortcut) path not implemented.
    return out


@functools.partial(jax.jit, static_argnames=("row_tile",))
def resnet_block_forward(x_nchw, temb, params, row_tile=None):
    # NOTE: only this single-block wrapper transposes; a stacked UNet should stay NHWC.
    x = jnp.transpose(x_nchw, (0, 2, 3, 1))
    out = resnet_block_forward_nhwc(x, temb, params, row_tile=row_tile)
    return jnp.transpose(out, (0, 3, 1, 2))


def init_params(key, in_channels, out_channels, temb_channels):
    ks = jax.random.split(key, 8)

    def rnd(k, shape, scale=0.1):
        return scale * jax.random.normal(k, shape, dtype=jnp.float32)

    p = {
        "norm1_g": jnp.ones((in_channels,), jnp.float32),
        "norm1_b": jnp.zeros((in_channels,), jnp.float32),
        "conv1_w": rnd(ks[0], (3, 3, in_channels, out_channels)),   # HWIO
        "conv1_b": rnd(ks[1], (out_channels,)),
        "temb_w": rnd(ks[2], (temb_channels, out_channels)),
        "temb_b": rnd(ks[3], (out_channels,)),
        "norm2_g": jnp.ones((out_channels,), jnp.float32),
        "norm2_b": jnp.zeros((out_channels,), jnp.float32),
        "conv2_w": rnd(ks[4], (3, 3, out_channels, out_channels)),
        "conv2_b": rnd(ks[5], (out_channels,)),
    }
    if in_channels != out_channels:
        p["nin_w"] = rnd(ks[6], (in_channels, out_channels))        # 1x1 conv == matmul
        p["nin_b"] = rnd(ks[7], (out_channels,))
    return p


# Pure-JAX reference mirroring the kernel's numerical choices
# (bf16 MXU inputs, fp32 accumulation, bf16 h1 intermediate).
def ref_forward(x_nchw, temb, p):
    x = jnp.transpose(x_nchw, (0, 2, 3, 1)).astype(jnp.float32)

    def gn(h, gamma, beta):
        N, H, W, C = h.shape
        hg = h.reshape(N, H, W, NUM_GROUPS, C // NUM_GROUPS)
        mean = hg.mean(axis=(1, 2, 4), keepdims=True)
        var = ((hg - mean) ** 2).mean(axis=(1, 2, 4), keepdims=True)
        hg = (hg - mean) * jax.lax.rsqrt(var + EPS)
        return hg.reshape(N, H, W, C) * gamma + beta

    def swish(v):
        return v * jax.nn.sigmoid(v)

    def conv3(h, w, bias):
        return jax.lax.conv_general_dilated(
            h.astype(jnp.bfloat16), w.astype(jnp.bfloat16), (1, 1), "SAME",
            dimension_numbers=("NHWC", "HWIO", "NHWC"),
            preferred_element_type=jnp.float32) + bias

    h = swish(gn(x, p["norm1_g"], p["norm1_b"]))
    h = conv3(h, p["conv1_w"], p["conv1_b"])
    tb = jnp.dot(swish(temb), p["temb_w"]) + p["temb_b"]
    h = h + tb[:, None, None, :]
    h = h.astype(jnp.bfloat16).astype(jnp.float32)     # kernel stores h1 in bf16
    h = swish(gn(h, p["norm2_g"], p["norm2_b"]))
    h = conv3(h, p["conv2_w"], p["conv2_b"])
    if "nin_w" in p:
        sc = jnp.dot(x.astype(jnp.bfloat16), p["nin_w"].astype(jnp.bfloat16),
                     preferred_element_type=jnp.float32) + p["nin_b"]
    else:
        sc = x
    return jnp.transpose(sc + h, (0, 3, 1, 2))


if __name__ == "__main__":
    # GroupNorm(32) requires channel counts divisible by 32.  Channel widths >= 128
    # exercise the aligned im2col path; 32/64 exercise the lane-unaligned fallback.
    N, Tc = 2, 64
    key = jax.random.PRNGKey(0)
    kx, kt, kp = jax.random.split(key, 3)
    temb = jax.random.normal(kt, (N, Tc), dtype=jnp.float32)

    def run_case(name, Cin, Cout, H, W, row_tile=None):
        x = jax.random.normal(kx, (N, Cin, H, W), dtype=jnp.float32)
        params = init_params(kp, Cin, Cout, Tc)
        out = jax.block_until_ready(
            resnet_block_forward(x, temb, params, row_tile=row_tile))
        assert out.shape == (N, Cout, H, W), out.shape
        ref = ref_forward(x, temb, params)
        err = float(jnp.max(jnp.abs(out - ref)))
        if err > 1e-2:
            raise AssertionError(f"Pallas mismatch ({name}): max abs err = {err}")

    # 1) nin (1x1) shortcut, small channels -> fallback 9-dot contraction path.
    run_case("nin shortcut / fallback taps", 32, 64, 8, 8)
    # 2) identity shortcut, 128 channels -> single im2col MXU dot path.
    run_case("identity shortcut / im2col", 128, 128, 8, 8)
    # 3) multiple row tiles -> halo rows + tiled GN stats + GN2 partial-sum reduce.
    run_case("multi row-tile / halos", 128, 128, 16, 8, row_tile=4)

    print("KERNEL_OK")
</pallas_src>

<mosaic_0001>
module attributes {stable_mosaic.version = 11 : i64} {
  func.func @_chan_stats_kernel(%arg0: i32, %arg1: i32, %arg2: memref<1x8x8x32xf32, #tpu.memory_space<vmem>>, %arg3: memref<1x1x32xf32, #tpu.memory_space<vmem>>, %arg4: memref<1x1x32xf32, #tpu.memory_space<vmem>>, %arg5: memref<1x32xf32, #tpu.memory_space<vmem>>, %arg6: memref<1x32xf32, #tpu.memory_space<vmem>>) attributes {dimension_semantics = [#tpu.dimension_semantics<parallel>, #tpu.dimension_semantics<arbitrary>], iteration_bounds = array<i64: 2, 1>, scalar_prefetch = 0 : i64, scratch_operands = 2 : i64, tpu.core_type = #tpu.core_type<tc>, window_params = [{transform_indices = @transform_0, window_bounds = array<i64: 1, 8, 8, 32>}, {transform_indices = @transform_1, window_bounds = array<i64: 1, 1, 32>}, {transform_indices = @transform_2, window_bounds = array<i64: 1, 1, 32>}]} {
    %c0 = arith.constant 0 : index
    %c0_0 = arith.constant 0 : index
    %c0_1 = arith.constant 0 : index
    %c0_2 = arith.constant 0 : index
    %0 = vector.load %arg2[%c0, %c0_0, %c0_1, %c0_2] : memref<1x8x8x32xf32, #tpu.memory_space<vmem>>, vector<1x8x8x32xf32>
    %1 = vector.shape_cast %0 : vector<1x8x8x32xf32> to vector<64x32xf32>
    %c0_i32 = arith.constant 0 : i32
    %2 = arith.cmpi eq, %arg1, %c0_i32 : i32
    %3 = arith.extui %2 : i1 to i32
    %c0_i32_3 = arith.constant 0 : i32
    %4 = arith.cmpi ne, %3, %c0_i32_3 : i32
    scf.if %4 {
      %cst_15 = arith.constant 0.000000e+00 : f32
      %19 = vector.broadcast %cst_15 : f32 to vector<1x32xf32>
      %c0_16 = arith.constant 0 : index
      %c0_17 = arith.constant 0 : index
      %20 = vector.load %arg5[%c0_16, %c0_17] : memref<1x32xf32, #tpu.memory_space<vmem>>, vector<1x32xf32>
      tpu.vector_store %arg5[%c0_16, %c0_17], %19 {strides = array<i32>} : memref<1x32xf32, #tpu.memory_space<vmem>>, vector<1x32xf32>,
      %cst_18 = arith.constant 0.000000e+00 : f32
      %21 = vector.broadcast %cst_18 : f32 to vector<1x32xf32>
      %c0_19 = arith.constant 0 : index
      %c0_20 = arith.constant 0 : index
      %22 = vector.load %arg6[%c0_19, %c0_20] : memref<1x32xf32, #tpu.memory_space<vmem>>, vector<1x32xf32>
      tpu.vector_store %arg6[%c0_19, %c0_20], %21 {strides = array<i32>} : memref<1x32xf32, #tpu.memory_space<vmem>>, vector<1x32xf32>,
    } else {
    }
    %c0_4 = arith.constant 0 : index
    %c0_5 = arith.constant 0 : index
    %5 = vector.load %arg5[%c0_4, %c0_5] : memref<1x32xf32, #tpu.memory_space<vmem>>, vector<1x32xf32>
    %cst = arith.constant dense<0.000000e+00> : vector<32xf32>
    %6 = vector.multi_reduction <add>, %1, %cst [0] : vector<64x32xf32> to vector<32xf32>
    %7 = vector.shape_cast %6 : vector<32xf32> to vector<1x32xf32>
    %8 = arith.addf %5, %7 : vector<1x32xf32>
    %c0_6 = arith.constant 0 : index
    %c0_7 = arith.constant 0 : index
    %9 = vector.load %arg5[%c0_6, %c0_7] : memref<1x32xf32, #tpu.memory_space<vmem>>, vector<1x32xf32>
    tpu.vector_store %arg5[%c0_6, %c0_7], %8 {strides = array<i32>} : memref<1x32xf32, #tpu.memory_space<vmem>>, vector<1x32xf32>,
    %c0_8 = arith.constant 0 : index
    %c0_9 = arith.constant 0 : index
    %10 = vector.load %arg6[%c0_8, %c0_9] : memref<1x32xf32, #tpu.memory_space<vmem>>, vector<1x32xf32>
    %11 = arith.mulf %1, %1 : vector<64x32xf32>
    %cst_10 = arith.constant dense<0.000000e+00> : vector<32xf32>
    %12 = vector.multi_reduction <add>, %11, %cst_10 [0] : vector<64x32xf32> to vector<32xf32>
    %13 = vector.shape_cast %12 : vector<32xf32> to vector<1x32xf32>
    %14 = arith.addf %10, %13 : vector<1x32xf32>
    %c0_11 = arith.constant 0 : index
    %c0_12 = arith.constant 0 : index
    %15 = vector.load %arg6[%c0_11, %c0_12] : memref<1x32xf32, #tpu.memory_space<vmem>>, vector<1x32xf32>
    tpu.vector_store %arg6[%c0_11, %c0_12], %14 {strides = array<i32>} : memref<1x32xf32, #tpu.memory_space<vmem>>, vector<1x32xf32>,
    %c0_i32_13 = arith.constant 0 : i32
    %16 = arith.cmpi eq, %arg1, %c0_i32_13 : i32
    %17 = arith.extui %16 : i1 to i32
    %c0_i32_14 = arith.constant 0 : i32
    %18 = arith.cmpi ne, %17, %c0_i32_14 : i32
    scf.if %18 {
      %c0_15 = arith.constant 0 : index
      %c0_16 = arith.constant 0 : index
      %19 = vector.load %arg5[%c0_15, %c0_16] : memref<1x32xf32, #tpu.memory_space<vmem>>, vector<1x32xf32>
      %20 = vector.shape_cast %19 : vector<1x32xf32> to vector<1x1x32xf32>
      %c0_17 = arith.constant 0 : index
      %c0_18 = arith.constant 0 : index
      %c0_19 = arith.constant 0 : index
      %21 = vector.load %arg3[%c0_17, %c0_18, %c0_19] : memref<1x1x32xf32, #tpu.memory_space<vmem>>, vector<1x1x32xf32>
      tpu.vector_store %arg3[%c0_17, %c0_18, %c0_19], %20 {strides = array<i32>} : memref<1x1x32xf32, #tpu.memory_space<vmem>>, vector<1x1x32xf32>,
      %c0_20 = arith.constant 0 : index
      %c0_21 = arith.constant 0 : index
      %22 = vector.load %arg6[%c0_20, %c0_21] : memref<1x32xf32, #tpu.memory_space<vmem>>, vector<1x32xf32>
      %23 = vector.shape_cast %22 : vector<1x32xf32> to vector<1x1x32xf32>
      %c0_22 = arith.constant 0 : index
      %c0_23 = arith.constant 0 : index
      %c0_24 = arith.constant 0 : index
      %24 = vector.load %arg4[%c0_22, %c0_23, %c0_24] : memref<1x1x32xf32, #tpu.memory_space<vmem>>, vector<1x1x32xf32>
      tpu.vector_store %arg4[%c0_22, %c0_23, %c0_24], %23 {strides = array<i32>} : memref<1x1x32xf32, #tpu.memory_space<vmem>>, vector<1x1x32xf32>,
    } else {
    }
    return
  }
  func.func @transform_0(%arg0: i32, %arg1: i32) -> (i32, i32, i32, i32) {
    %c0_i32 = arith.constant 0 : i32
    %c0_i32_0 = arith.constant 0 : i32
    %c0_i32_1 = arith.constant 0 : i32
    return %arg0, %arg1, %c0_i32, %c0_i32_0 : i32, i32, i32, i32
  }
  func.func @transform_1(%arg0: i32, %arg1: i32) -> (i32, i32, i32) {
    %c0_i32 = arith.constant 0 : i32
    %c0_i32_0 = arith.constant 0 : i32
    %c0_i32_1 = arith.constant 0 : i32
    return %arg0, %c0_i32, %c0_i32_0 : i32, i32, i32
  }
  func.func @transform_2(%arg0: i32, %arg1: i32) -> (i32, i32, i32) {
    %c0_i32 = arith.constant 0 : i32
    %c0_i32_0 = arith.constant 0 : i32
    %c0_i32_1 = arith.constant 0 : i32
    return %arg0, %c0_i32, %c0_i32_0 : i32, i32, i32
  }
}

module attributes {stable_mosaic.version = 11 : i64} {
  func.func @_conv1_kernel(%arg0: i32, %arg1: i32, %arg2: memref<1x1x8x32xf32, #tpu.memory_space<vmem>>, %arg3: memref<1x8x8x32xf32, #tpu.memory_space<vmem>>, %arg4: memref<1x1x8x32xf32, #tpu.memory_space<vmem>>, %arg5: memref<1x1x32xf32, #tpu.memory_space<vmem>>, %arg6: memref<1x1x32xf32, #tpu.memory_space<vmem>>, %arg7: memref<288x64xbf16, #tpu.memory_space<vmem>>, %arg8: memref<1x1x64xf32, #tpu.memory_space<vmem>>, %arg9: memref<1x8x8x64xbf16, #tpu.memory_space<vmem>>, %arg10: memref<1x1x1x64xf32, #tpu.memory_space<vmem>>, %arg11: memref<1x1x1x64xf32, #tpu.memory_space<vmem>>) attributes {dimension_semantics = [#tpu.dimension_semantics<parallel>, #tpu.dimension_semantics<parallel>], iteration_bounds = array<i64: 2, 1>, scalar_prefetch = 0 : i64, scratch_operands = 0 : i64, tpu.core_type = #tpu.core_type<tc>, window_params = [{transform_indices = @transform_0, window_bounds = array<i64: 1, 1, 8, 32>}, {transform_indices = @transform_1, window_bounds = array<i64: 1, 8, 8, 32>}, {transform_indices = @transform_2, window_bounds = array<i64: 1, 1, 8, 32>}, {transform_indices = @transform_3, window_bounds = array<i64: 1, 1, 32>}, {transform_indices = @transform_4, window_bounds = array<i64: 1, 1, 32>}, {pipeline_mode = #tpu.pipeline_mode<synchronous>, transform_indices = @transform_5, window_bounds = array<i64: 288, 64>}, {transform_indices = @transform_6, window_bounds = array<i64: 1, 1, 64>}, {transform_indices = @transform_7, window_bounds = array<i64: 1, 8, 8, 64>}, {transform_indices = @transform_8, window_bounds = array<i64: 1, 1, 1, 64>}, {transform_indices = @transform_9, window_bounds = array<i64: 1, 1, 1, 64>}]} {
    %c0 = arith.constant 0 : index
    %c0_0 = arith.constant 0 : index
    %c0_1 = arith.constant 0 : index
    %0 = vector.load %arg5[%c0, %c0_0, %c0_1] : memref<1x1x32xf32, #tpu.memory_space<vmem>>, vector<1x1x32xf32>
    %c0_2 = arith.constant 0 : index
    %c0_3 = arith.constant 0 : index
    %c0_4 = arith.constant 0 : index
    %1 = vector.load %arg6[%c0_2, %c0_3, %c0_4] : memref<1x1x32xf32, #tpu.memory_space<vmem>>, vector<1x1x32xf32>
    %c0_i32 = arith.constant 0 : i32
    %2 = arith.cmpi sgt, %arg1, %c0_i32 : i32
    %c0_5 = arith.constant 0 : index
    %c0_6 = arith.constant 0 : index
    %c0_7 = arith.constant 0 : index
    %c0_8 = arith.constant 0 : index
    %3 = vector.load %arg2[%c0_5, %c0_6, %c0_7, %c0_8] : memref<1x1x8x32xf32, #tpu.memory_space<vmem>>, vector<1x1x8x32xf32>
    %4 = vector.shape_cast %3 : vector<1x1x8x32xf32> to vector<1x8x32xf32>
    %5 = vector.broadcast %0 : vector<1x1x32xf32> to vector<1x8x32xf32>
    %6 = arith.mulf %4, %5 : vector<1x8x32xf32>
    %7 = vector.broadcast %1 : vector<1x1x32xf32> to vector<1x8x32xf32>
    %8 = arith.addf %6, %7 : vector<1x8x32xf32>
    %9 = arith.negf %8 : vector<1x8x32xf32>
    %10 = math.exp %9 : vector<1x8x32xf32>
    %cst = arith.constant 1.000000e+00 : f32
    %11 = vector.broadcast %cst : f32 to vector<1x8x32xf32>
    %12 = arith.addf %11, %10 : vector<1x8x32xf32>
    %13 = arith.divf %11, %12 : vector<1x8x32xf32>
    %14 = arith.mulf %8, %13 : vector<1x8x32xf32>
    %cst_9 = arith.constant 0.000000e+00 : f32
    %15 = vector.broadcast %cst_9 : f32 to vector<1x8x32xf32>
    %16 = arith.select %2, %14, %15 : vector<1x8x32xf32>
    %c0_10 = arith.constant 0 : index
    %c0_11 = arith.constant 0 : index
    %c0_12 = arith.constant 0 : index
    %c0_13 = arith.constant 0 : index
    %17 = vector.load %arg3[%c0_10, %c0_11, %c0_12, %c0_13] : memref<1x8x8x32xf32, #tpu.memory_space<vmem>>, vector<1x8x8x32xf32>
    %18 = vector.shape_cast %17 : vector<1x8x8x32xf32> to vector<8x8x32xf32>
    %19 = vector.broadcast %0 : vector<1x1x32xf32> to vector<8x8x32xf32>
    %20 = arith.mulf %18, %19 : vector<8x8x32xf32>
    %21 = vector.broadcast %1 : vector<1x1x32xf32> to vector<8x8x32xf32>
    %22 = arith.addf %20, %21 : vector<8x8x32xf32>
    %23 = arith.negf %22 : vector<8x8x32xf32>
    %24 = math.exp %23 : vector<8x8x32xf32>
    %cst_14 = arith.constant 1.000000e+00 : f32
    %25 = vector.broadcast %cst_14 : f32 to vector<8x8x32xf32>
    %26 = arith.addf %25, %24 : vector<8x8x32xf32>
    %27 = arith.divf %25, %26 : vector<8x8x32xf32>
    %28 = arith.mulf %22, %27 : vector<8x8x32xf32>
    %c0_i32_15 = arith.constant 0 : i32
    %29 = arith.cmpi slt, %arg1, %c0_i32_15 : i32
    %c0_16 = arith.constant 0 : index
    %c0_17 = arith.constant 0 : index
    %c0_18 = arith.constant 0 : index
    %c0_19 = arith.constant 0 : index
    %30 = vector.load %arg4[%c0_16, %c0_17, %c0_18, %c0_19] : memref<1x1x8x32xf32, #tpu.memory_space<vmem>>, vector<1x1x8x32xf32>
    %31 = vector.shape_cast %30 : vector<1x1x8x32xf32> to vector<1x8x32xf32>
    %32 = vector.broadcast %0 : vector<1x1x32xf32> to vector<1x8x32xf32>
    %33 = arith.mulf %31, %32 : vector<1x8x32xf32>
    %34 = vector.broadcast %1 : vector<1x1x32xf32> to vector<1x8x32xf32>
    %35 = arith.addf %33, %34 : vector<1x8x32xf32>
    %36 = arith.negf %35 : vector<1x8x32xf32>
    %37 = math.exp %36 : vector<1x8x32xf32>
    %cst_20 = arith.constant 1.000000e+00 : f32
    %38 = vector.broadcast %cst_20 : f32 to vector<1x8x32xf32>
    %39 = arith.addf %38, %37 : vector<1x8x32xf32>
    %40 = arith.divf %38, %39 : vector<1x8x32xf32>
    %41 = arith.mulf %35, %40 : vector<1x8x32xf32>
    %cst_21 = arith.constant 0.000000e+00 : f32
    %42 = vector.broadcast %cst_21 : f32 to vector<1x8x32xf32>
    %43 = arith.select %29, %41, %42 : vector<1x8x32xf32>
    %44 = tpu.concatenate %16, %28, %43 in 0 : vector<1x8x32xf32>, vector<8x8x32xf32>, vector<1x8x32xf32> -> vector<10x8x32xf32>
    %cst_22 = arith.constant 0.000000e+00 : f32
    %45 = vector.broadcast %cst_22 : f32 to vector<10x1x32xf32>
    %46 = vector.extract_strided_slice %44 {offsets = [0, 0, 0], sizes = [10, 7, 32], strides = [1, 1, 1]} : vector<10x8x32xf32> to vector<10x7x32xf32>
    %47 = tpu.concatenate %45, %46 in 1 : vector<10x1x32xf32>, vector<10x7x32xf32> -> vector<10x8x32xf32>
    %48 = vector.extract_strided_slice %44 {offsets = [0, 1, 0], sizes = [10, 7, 32], strides = [1, 1, 1]} : vector<10x8x32xf32> to vector<10x7x32xf32>
    %49 = tpu.concatenate %48, %45 in 1 : vector<10x7x32xf32>, vector<10x1x32xf32> -> vector<10x8x32xf32>
    %50 = arith.truncf %47 : vector<10x8x32xf32> to vector<10x8x32xbf16>
    %51 = arith.truncf %44 : vector<10x8x32xf32> to vector<10x8x32xbf16>
    %52 = arith.truncf %49 : vector<10x8x32xf32> to vector<10x8x32xbf16>
    %cst_23 = arith.constant 0.000000e+00 : f32
    %53 = vector.broadcast %cst_23 : f32 to vector<64x64xf32>
    %54 = vector.extract_strided_slice %50 {offsets = [0, 0, 0], sizes = [8, 8, 32], strides = [1, 1, 1]} : vector<10x8x32xbf16> to vector<8x8x32xbf16>
    %55 = vector.shape_cast %54 : vector<8x8x32xbf16> to vector<64x32xbf16>
    %c0_24 = arith.constant 0 : index
    %c0_25 = arith.constant 0 : index
    %56 = vector.load %arg7[%c0_24, %c0_25] : memref<288x64xbf16, #tpu.memory_space<vmem>>, vector<32x64xbf16>
    %cst_26 = arith.constant dense<0.000000e+00> : vector<64x64xf32>
    %57 = tpu.matmul %55, %56, %cst_26 {dimension_numbers = #tpu.dot_dimension_numbers<[1], [0], [0], [1], [0, 0, 1, 1], [], []>} : vector<64x32xbf16>, vector<32x64xbf16>, vector<64x64xf32> -> vector<64x64xf32>
    %58 = arith.addf %53, %57 : vector<64x64xf32>
    %59 = vector.extract_strided_slice %51 {offsets = [0, 0, 0], sizes = [8, 8, 32], strides = [1, 1, 1]} : vector<10x8x32xbf16> to vector<8x8x32xbf16>
    %60 = vector.shape_cast %59 : vector<8x8x32xbf16> to vector<64x32xbf16>
    %c32 = arith.constant 32 : index
    %c0_27 = arith.constant 0 : index
    %61 = vector.load %arg7[%c32, %c0_27] : memref<288x64xbf16, #tpu.memory_space<vmem>>, vector<32x64xbf16>
    %cst_28 = arith.constant dense<0.000000e+00> : vector<64x64xf32>
    %62 = tpu.matmul %60, %61, %cst_28 {dimension_numbers = #tpu.dot_dimension_numbers<[1], [0], [0], [1], [0, 0, 1, 1], [], []>} : vector<64x32xbf16>, vector<32x64xbf16>, vector<64x64xf32> -> vector<64x64xf32>
    %63 = arith.addf %58, %62 : vector<64x64xf32>
    %64 = vector.extract_strided_slice %52 {offsets = [0, 0, 0], sizes = [8, 8, 32], strides = [1, 1, 1]} : vector<10x8x32xbf16> to vector<8x8x32xbf16>
    %65 = vector.shape_cast %64 : vector<8x8x32xbf16> to vector<64x32xbf16>
    %c64 = arith.constant 64 : index
    %c0_29 = arith.constant 0 : index
    %66 = vector.load %arg7[%c64, %c0_29] : memref<288x64xbf16, #tpu.memory_space<vmem>>, vector<32x64xbf16>
    %cst_30 = arith.constant dense<0.000000e+00> : vector<64x64xf32>
    %67 = tpu.matmul %65, %66, %cst_30 {dimension_numbers = #tpu.dot_dimension_numbers<[1], [0], [0], [1], [0, 0, 1, 1], [], []>} : vector<64x32xbf16>, vector<32x64xbf16>, vector<64x64xf32> -> vector<64x64xf32>
    %68 = arith.addf %63, %67 : vector<64x64xf32>
    %69 = vector.extract_strided_slice %50 {offsets = [1, 0, 0], sizes = [8, 8, 32], strides = [1, 1, 1]} : vector<10x8x32xbf16> to vector<8x8x32xbf16>
    %70 = vector.shape_cast %69 : vector<8x8x32xbf16> to vector<64x32xbf16>
    %c96 = arith.constant 96 : index
    %c0_31 = arith.constant 0 : index
    %71 = vector.load %arg7[%c96, %c0_31] : memref<288x64xbf16, #tpu.memory_space<vmem>>, vector<32x64xbf16>
    %cst_32 = arith.constant dense<0.000000e+00> : vector<64x64xf32>
    %72 = tpu.matmul %70, %71, %cst_32 {dimension_numbers = #tpu.dot_dimension_numbers<[1], [0], [0], [1], [0, 0, 1, 1], [], []>} : vector<64x32xbf16>, vector<32x64xbf16>, vector<64x64xf32> -> vector<64x64xf32>
    %73 = arith.addf %68, %72 : vector<64x64xf32>
    %74 = vector.extract_strided_slice %51 {offsets = [1, 0, 0], sizes = [8, 8, 32], strides = [1, 1, 1]} : vector<10x8x32xbf16> to vector<8x8x32xbf16>
    %75 = vector.shape_cast %74 : vector<8x8x32xbf16> to vector<64x32xbf16>
    %c128 = arith.constant 128 : index
    %c0_33 = arith.constant 0 : index
    %76 = vector.load %arg7[%c128, %c0_33] : memref<288x64xbf16, #tpu.memory_space<vmem>>, vector<32x64xbf16>
    %cst_34 = arith.constant dense<0.000000e+00> : vector<64x64xf32>
    %77 = tpu.matmul %75, %76, %cst_34 {dimension_numbers = #tpu.dot_dimension_numbers<[1], [0], [0], [1], [0, 0, 1, 1], [], []>} : vector<64x32xbf16>, vector<32x64xbf16>, vector<64x64xf32> -> vector<64x64xf32>
    %78 = arith.addf %73, %77 : vector<64x64xf32>
    %79 = vector.extract_strided_slice %52 {offsets = [1, 0, 0], sizes = [8, 8, 32], strides = [1, 1, 1]} : vector<10x8x32xbf16> to vector<8x8x32xbf16>
    %80 = vector.shape_cast %79 : vector<8x8x32xbf16> to vector<64x32xbf16>
    %c160 = arith.constant 160 : index
    %c0_35 = arith.constant 0 : index
    %81 = vector.load %arg7[%c160, %c0_35] : memref<288x64xbf16, #tpu.memory_space<vmem>>, vector<32x64xbf16>
    %cst_36 = arith.constant dense<0.000000e+00> : vector<64x64xf32>
    %82 = tpu.matmul %80, %81, %cst_36 {dimension_numbers = #tpu.dot_dimension_numbers<[1], [0], [0], [1], [0, 0, 1, 1], [], []>} : vector<64x32xbf16>, vector<32x64xbf16>, vector<64x64xf32> -> vector<64x64xf32>
    %83 = arith.addf %78, %82 : vector<64x64xf32>
    %84 = vector.extract_strided_slice %50 {offsets = [2, 0, 0], sizes = [8, 8, 32], strides = [1, 1, 1]} : vector<10x8x32xbf16> to vector<8x8x32xbf16>
    %85 = vector.shape_cast %84 : vector<8x8x32xbf16> to vector<64x32xbf16>
    %c192 = arith.constant 192 : index
    %c0_37 = arith.constant 0 : index
    %86 = vector.load %arg7[%c192, %c0_37] : memref<288x64xbf16, #tpu.memory_space<vmem>>, vector<32x64xbf16>
    %cst_38 = arith.constant dense<0.000000e+00> : vector<64x64xf32>
    %87 = tpu.matmul %85, %86, %cst_38 {dimension_numbers = #tpu.dot_dimension_numbers<[1], [0], [0], [1], [0, 0, 1, 1], [], []>} : vector<64x32xbf16>, vector<32x64xbf16>, vector<64x64xf32> -> vector<64x64xf32>
    %88 = arith.addf %83, %87 : vector<64x64xf32>
    %89 = vector.extract_strided_slice %51 {offsets = [2, 0, 0], sizes = [8, 8, 32], strides = [1, 1, 1]} : vector<10x8x32xbf16> to vector<8x8x32xbf16>
    %90 = vector.shape_cast %89 : vector<8x8x32xbf16> to vector<64x32xbf16>
    %c224 = arith.constant 224 : index
    %c0_39 = arith.constant 0 : index
    %91 = vector.load %arg7[%c224, %c0_39] : memref<288x64xbf16, #tpu.memory_space<vmem>>, vector<32x64xbf16>
    %cst_40 = arith.constant dense<0.000000e+00> : vector<64x64xf32>
    %92 = tpu.matmul %90, %91, %cst_40 {dimension_numbers = #tpu.dot_dimension_numbers<[1], [0], [0], [1], [0, 0, 1, 1], [], []>} : vector<64x32xbf16>, vector<32x64xbf16>, vector<64x64xf32> -> vector<64x64xf32>
    %93 = arith.addf %88, %92 : vector<64x64xf32>
    %94 = vector.extract_strided_slice %52 {offsets = [2, 0, 0], sizes = [8, 8, 32], strides = [1, 1, 1]} : vector<10x8x32xbf16> to vector<8x8x32xbf16>
    %95 = vector.shape_cast %94 : vector<8x8x32xbf16> to vector<64x32xbf16>
    %c256 = arith.constant 256 : index
    %c0_41 = arith.constant 0 : index
    %96 = vector.load %arg7[%c256, %c0_41] : memref<288x64xbf16, #tpu.memory_space<vmem>>, vector<32x64xbf16>
    %cst_42 = arith.constant dense<0.000000e+00> : vector<64x64xf32>
    %97 = tpu.matmul %95, %96, %cst_42 {dimension_numbers = #tpu.dot_dimension_numbers<[1], [0], [0], [1], [0, 0, 1, 1], [], []>} : vector<64x32xbf16>, vector<32x64xbf16>, vector<64x64xf32> -> vector<64x64xf32>
    %98 = arith.addf %93, %97 : vector<64x64xf32>
    %c0_43 = arith.constant 0 : index
    %c0_44 = arith.constant 0 : index
    %c0_45 = arith.constant 0 : index
    %99 = vector.load %arg8[%c0_43, %c0_44, %c0_45] : memref<1x1x64xf32, #tpu.memory_space<vmem>>, vector<1x1x64xf32>
    %100 = vector.shape_cast %99 : vector<1x1x64xf32> to vector<1x64xf32>
    %101 = vector.broadcast %100 : vector<1x64xf32> to vector<64x64xf32>
    %102 = arith.addf %98, %101 : vector<64x64xf32>
    %103 = arith.truncf %102 : vector<64x64xf32> to vector<64x64xbf16>
    %104 = vector.shape_cast %103 : vector<64x64xbf16> to vector<1x8x8x64xbf16>
    %c0_46 = arith.constant 0 : index
    %c0_47 = arith.constant 0 : index
    %c0_48 = arith.constant 0 : index
    %c0_49 = arith.constant 0 : index
    %105 = vector.load %arg9[%c0_46, %c0_47, %c0_48, %c0_49] : memref<1x8x8x64xbf16, #tpu.memory_space<vmem>>, vector<1x8x8x64xbf16>
    tpu.vector_store %arg9[%c0_46, %c0_47, %c0_48, %c0_49], %104 {strides = array<i32>} : memref<1x8x8x64xbf16, #tpu.memory_space<vmem>>, vector<1x8x8x64xbf16>,
    %106 = arith.extf %103 : vector<64x64xbf16> to vector<64x64xf32>
    %cst_50 = arith.constant dense<0.000000e+00> : vector<64xf32>
    %107 = vector.multi_reduction <add>, %106, %cst_50 [0] : vector<64x64xf32> to vector<64xf32>
    %108 = vector.shape_cast %107 : vector<64xf32> to vector<1x64xf32>
    %109 = vector.shape_cast %108 : vector<1x64xf32> to vector<1x1x1x64xf32>
    %c0_51 = arith.constant 0 : index
    %c0_52 = arith.constant 0 : index
    %c0_53 = arith.constant 0 : index
    %c0_54 = arith.constant 0 : index
    %110 = vector.load %arg10[%c0_51, %c0_52, %c0_53, %c0_54] : memref<1x1x1x64xf32, #tpu.memory_space<vmem>>, vector<1x1x1x64xf32>
    tpu.vector_store %arg10[%c0_51, %c0_52, %c0_53, %c0_54], %109 {strides = array<i32>} : memref<1x1x1x64xf32, #tpu.memory_space<vmem>>, vector<1x1x1x64xf32>,
    %111 = arith.mulf %106, %106 : vector<64x64xf32>
    %cst_55 = arith.constant dense<0.000000e+00> : vector<64xf32>
    %112 = vector.multi_reduction <add>, %111, %cst_55 [0] : vector<64x64xf32> to vector<64xf32>
    %113 = vector.shape_cast %112 : vector<64xf32> to vector<1x64xf32>
    %114 = vector.shape_cast %113 : vector<1x64xf32> to vector<1x1x1x64xf32>
    %c0_56 = arith.constant 0 : index
    %c0_57 = arith.constant 0 : index
    %c0_58 = arith.constant 0 : index
    %c0_59 = arith.constant 0 : index
    %115 = vector.load %arg11[%c0_56, %c0_57, %c0_58, %c0_59] : memref<1x1x1x64xf32, #tpu.memory_space<vmem>>, vector<1x1x1x64xf32>
    tpu.vector_store %arg11[%c0_56, %c0_57, %c0_58, %c0_59], %114 {strides = array<i32>} : memref<1x1x1x64xf32, #tpu.memory_space<vmem>>, vector<1x1x1x64xf32>,
    return
  }
  func.func @transform_0(%arg0: i32, %arg1: i32) -> (i32, i32, i32, i32) {
    %c8_i32 = arith.constant 8 : i32
    %0 = arith.muli %arg1, %c8_i32 : i32
    %c1_i32 = arith.constant 1 : i32
    %1 = arith.subi %0, %c1_i32 : i32
    %c0_i32 = arith.constant 0 : i32
    %2 = arith.maxsi %1, %c0_i32 : i32
    %c0_i32_0 = arith.constant 0 : i32
    %c0_i32_1 = arith.constant 0 : i32
    %c0_i32_2 = arith.constant 0 : i32
    return %arg0, %2, %c0_i32_0, %c0_i32_1 : i32, i32, i32, i32
  }
  func.func @transform_1(%arg0: i32, %arg1: i32) -> (i32, i32, i32, i32) {
    %c0_i32 = arith.constant 0 : i32
    %c0_i32_0 = arith.constant 0 : i32
    %c0_i32_1 = arith.constant 0 : i32
    return %arg0, %arg1, %c0_i32, %c0_i32_0 : i32, i32, i32, i32
  }
  func.func @transform_2(%arg0: i32, %arg1: i32) -> (i32, i32, i32, i32) {
    %c8_i32 = arith.constant 8 : i32
    %0 = arith.muli %arg1, %c8_i32 : i32
    %c8_i32_0 = arith.constant 8 : i32
    %1 = arith.addi %0, %c8_i32_0 : i32
    %c7_i32 = arith.constant 7 : i32
    %2 = arith.minsi %1, %c7_i32 : i32
    %c0_i32 = arith.constant 0 : i32
    %c0_i32_1 = arith.constant 0 : i32
    %c0_i32_2 = arith.constant 0 : i32
    return %arg0, %2, %c0_i32, %c0_i32_1 : i32, i32, i32, i32
  }
  func.func @transform_3(%arg0: i32, %arg1: i32) -> (i32, i32, i32) {
    %c0_i32 = arith.constant 0 : i32
    %c0_i32_0 = arith.constant 0 : i32
    %c0_i32_1 = arith.constant 0 : i32
    return %arg0, %c0_i32, %c0_i32_0 : i32, i32, i32
  }
  func.func @transform_4(%arg0: i32, %arg1: i32) -> (i32, i32, i32) {
    %c0_i32 = arith.constant 0 : i32
    %c0_i32_0 = arith.constant 0 : i32
    %c0_i32_1 = arith.constant 0 : i32
    return %arg0, %c0_i32, %c0_i32_0 : i32, i32, i32
  }
  func.func @transform_5(%arg0: i32, %arg1: i32) -> (i32, i32) {
    %c0_i32 = arith.constant 0 : i32
    %c0_i32_0 = arith.constant 0 : i32
    %c0_i32_1 = arith.constant 0 : i32
    return %c0_i32, %c0_i32_0 : i32, i32
  }
  func.func @transform_6(%arg0: i32, %arg1: i32) -> (i32, i32, i32) {
    %c0_i32 = arith.constant 0 : i32
    %c0_i32_0 = arith.constant 0 : i32
    %c0_i32_1 = arith.constant 0 : i32
    return %arg0, %c0_i32, %c0_i32_0 : i32, i32, i32
  }
  func.func @transform_7(%arg0: i32, %arg1: i32) -> (i32, i32, i32, i32) {
    %c0_i32 = arith.constant 0 : i32
    %c0_i32_0 = arith.constant 0 : i32
    %c0_i32_1 = arith.constant 0 : i32
    return %arg0, %arg1, %c0_i32, %c0_i32_0 : i32, i32, i32, i32
  }
  func.func @transform_8(%arg0: i32, %arg1: i32) -> (i32, i32, i32, i32) {
    %c0_i32 = arith.constant 0 : i32
    %c0_i32_0 = arith.constant 0 : i32
    %c0_i32_1 = arith.constant 0 : i32
    return %arg0, %arg1, %c0_i32, %c0_i32_0 : i32, i32, i32, i32
  }
  func.func @transform_9(%arg0: i32, %arg1: i32) -> (i32, i32, i32, i32) {
    %c0_i32 = arith.constant 0 : i32
    %c0_i32_0 = arith.constant 0 : i32
    %c0_i32_1 = arith.constant 0 : i32
    return %arg0, %arg1, %c0_i32, %c0_i32_0 : i32, i32, i32, i32
  }
}

module attributes {stable_mosaic.version = 11 : i64} {
  func.func @kernel(%arg0: i32, %arg1: i32, %arg2: memref<1x1x8x64xbf16, #tpu.memory_space<vmem>>, %arg3: memref<1x8x8x64xbf16, #tpu.memory_space<vmem>>, %arg4: memref<1x1x8x64xbf16, #tpu.memory_space<vmem>>, %arg5: memref<1x1x64xf32, #tpu.memory_space<vmem>>, %arg6: memref<1x1x64xf32, #tpu.memory_space<vmem>>, %arg7: memref<576x64xbf16, #tpu.memory_space<vmem>>, %arg8: memref<1x64xf32, #tpu.memory_space<vmem>>, %arg9: memref<1x8x8x32xf32, #tpu.memory_space<vmem>>, %arg10: memref<32x64xbf16, #tpu.memory_space<vmem>>, %arg11: memref<1x8x8x64xf32, #tpu.memory_space<vmem>>) attributes {dimension_semantics = [#tpu.dimension_semantics<parallel>, #tpu.dimension_semantics<parallel>], iteration_bounds = array<i64: 2, 1>, scalar_prefetch = 0 : i64, scratch_operands = 0 : i64, tpu.core_type = #tpu.core_type<tc>, window_params = [{transform_indices = @transform_0, window_bounds = array<i64: 1, 1, 8, 64>}, {transform_indices = @transform_1, window_bounds = array<i64: 1, 8, 8, 64>}, {transform_indices = @transform_2, window_bounds = array<i64: 1, 1, 8, 64>}, {transform_indices = @transform_3, window_bounds = array<i64: 1, 1, 64>}, {transform_indices = @transform_4, window_bounds = array<i64: 1, 1, 64>}, {pipeline_mode = #tpu.pipeline_mode<synchronous>, transform_indices = @transform_5, window_bounds = array<i64: 576, 64>}, {pipeline_mode = #tpu.pipeline_mode<synchronous>, transform_indices = @transform_6, window_bounds = array<i64: 1, 64>}, {transform_indices = @transform_7, window_bounds = array<i64: 1, 8, 8, 32>}, {pipeline_mode = #tpu.pipeline_mode<synchronous>, transform_indices = @transform_8, window_bounds = array<i64: 32, 64>}, {transform_indices = @transform_9, window_bounds = array<i64: 1, 8, 8, 64>}]} {
    %c0 = arith.constant 0 : index
    %c0_0 = arith.constant 0 : index
    %c0_1 = arith.constant 0 : index
    %0 = vector.load %arg5[%c0, %c0_0, %c0_1] : memref<1x1x64xf32, #tpu.memory_space<vmem>>, vector<1x1x64xf32>
    %c0_2 = arith.constant 0 : index
    %c0_3 = arith.constant 0 : index
    %c0_4 = arith.constant 0 : index
    %1 = vector.load %arg6[%c0_2, %c0_3, %c0_4] : memref<1x1x64xf32, #tpu.memory_space<vmem>>, vector<1x1x64xf32>
    %c0_i32 = arith.constant 0 : i32
    %2 = arith.cmpi sgt, %arg1, %c0_i32 : i32
    %c0_5 = arith.constant 0 : index
    %c0_6 = arith.constant 0 : index
    %c0_7 = arith.constant 0 : index
    %c0_8 = arith.constant 0 : index
    %3 = vector.load %arg2[%c0_5, %c0_6, %c0_7, %c0_8] : memref<1x1x8x64xbf16, #tpu.memory_space<vmem>>, vector<1x1x8x64xbf16>
    %4 = vector.shape_cast %3 : vector<1x1x8x64xbf16> to vector<1x8x64xbf16>
    %5 = arith.extf %4 : vector<1x8x64xbf16> to vector<1x8x64xf32>
    %6 = vector.broadcast %0 : vector<1x1x64xf32> to vector<1x8x64xf32>
    %7 = arith.mulf %5, %6 : vector<1x8x64xf32>
    %8 = vector.broadcast %1 : vector<1x1x64xf32> to vector<1x8x64xf32>
    %9 = arith.addf %7, %8 : vector<1x8x64xf32>
    %10 = arith.negf %9 : vector<1x8x64xf32>
    %11 = math.exp %10 : vector<1x8x64xf32>
    %cst = arith.constant 1.000000e+00 : f32
    %12 = vector.broadcast %cst : f32 to vector<1x8x64xf32>
    %13 = arith.addf %12, %11 : vector<1x8x64xf32>
    %14 = arith.divf %12, %13 : vector<1x8x64xf32>
    %15 = arith.mulf %9, %14 : vector<1x8x64xf32>
    %cst_9 = arith.constant 0.000000e+00 : f32
    %16 = vector.broadcast %cst_9 : f32 to vector<1x8x64xf32>
    %17 = arith.select %2, %15, %16 : vector<1x8x64xf32>
    %c0_10 = arith.constant 0 : index
    %c0_11 = arith.constant 0 : index
    %c0_12 = arith.constant 0 : index
    %c0_13 = arith.constant 0 : index
    %18 = vector.load %arg3[%c0_10, %c0_11, %c0_12, %c0_13] : memref<1x8x8x64xbf16, #tpu.memory_space<vmem>>, vector<1x8x8x64xbf16>
    %19 = vector.shape_cast %18 : vector<1x8x8x64xbf16> to vector<8x8x64xbf16>
    %20 = arith.extf %19 : vector<8x8x64xbf16> to vector<8x8x64xf32>
    %21 = vector.broadcast %0 : vector<1x1x64xf32> to vector<8x8x64xf32>
    %22 = arith.mulf %20, %21 : vector<8x8x64xf32>
    %23 = vector.broadcast %1 : vector<1x1x64xf32> to vector<8x8x64xf32>
    %24 = arith.addf %22, %23 : vector<8x8x64xf32>
    %25 = arith.negf %24 : vector<8x8x64xf32>
    %26 = math.exp %25 : vector<8x8x64xf32>
    %cst_14 = arith.constant 1.000000e+00 : f32
    %27 = vector.broadcast %cst_14 : f32 to vector<8x8x64xf32>
    %28 = arith.addf %27, %26 : vector<8x8x64xf32>
    %29 = arith.divf %27, %28 : vector<8x8x64xf32>
    %30 = arith.mulf %24, %29 : vector<8x8x64xf32>
    %c0_i32_15 = arith.constant 0 : i32
    %31 = arith.cmpi slt, %arg1, %c0_i32_15 : i32
    %c0_16 = arith.constant 0 : index
    %c0_17 = arith.constant 0 : index
    %c0_18 = arith.constant 0 : index
    %c0_19 = arith.constant 0 : index
    %32 = vector.load %arg4[%c0_16, %c0_17, %c0_18, %c0_19] : memref<1x1x8x64xbf16, #tpu.memory_space<vmem>>, vector<1x1x8x64xbf16>
    %33 = vector.shape_cast %32 : vector<1x1x8x64xbf16> to vector<1x8x64xbf16>
    %34 = arith.extf %33 : vector<1x8x64xbf16> to vector<1x8x64xf32>
    %35 = vector.broadcast %0 : vector<1x1x64xf32> to vector<1x8x64xf32>
    %36 = arith.mulf %34, %35 : vector<1x8x64xf32>
    %37 = vector.broadcast %1 : vector<1x1x64xf32> to vector<1x8x64xf32>
    %38 = arith.addf %36, %37 : vector<1x8x64xf32>
    %39 = arith.negf %38 : vector<1x8x64xf32>
    %40 = math.exp %39 : vector<1x8x64xf32>
    %cst_20 = arith.constant 1.000000e+00 : f32
    %41 = vector.broadcast %cst_20 : f32 to vector<1x8x64xf32>
    %42 = arith.addf %41, %40 : vector<1x8x64xf32>
    %43 = arith.divf %41, %42 : vector<1x8x64xf32>
    %44 = arith.mulf %38, %43 : vector<1x8x64xf32>
    %cst_21 = arith.constant 0.000000e+00 : f32
    %45 = vector.broadcast %cst_21 : f32 to vector<1x8x64xf32>
    %46 = arith.select %31, %44, %45 : vector<1x8x64xf32>
    %47 = tpu.concatenate %17, %30, %46 in 0 : vector<1x8x64xf32>, vector<8x8x64xf32>, vector<1x8x64xf32> -> vector<10x8x64xf32>
    %cst_22 = arith.constant 0.000000e+00 : f32
    %48 = vector.broadcast %cst_22 : f32 to vector<10x1x64xf32>
    %49 = vector.extract_strided_slice %47 {offsets = [0, 0, 0], sizes = [10, 7, 64], strides = [1, 1, 1]} : vector<10x8x64xf32> to vector<10x7x64xf32>
    %50 = tpu.concatenate %48, %49 in 1 : vector<10x1x64xf32>, vector<10x7x64xf32> -> vector<10x8x64xf32>
    %51 = vector.extract_strided_slice %47 {offsets = [0, 1, 0], sizes = [10, 7, 64], strides = [1, 1, 1]} : vector<10x8x64xf32> to vector<10x7x64xf32>
    %52 = tpu.concatenate %51, %48 in 1 : vector<10x7x64xf32>, vector<10x1x64xf32> -> vector<10x8x64xf32>
    %53 = arith.truncf %50 : vector<10x8x64xf32> to vector<10x8x64xbf16>
    %54 = arith.truncf %47 : vector<10x8x64xf32> to vector<10x8x64xbf16>
    %55 = arith.truncf %52 : vector<10x8x64xf32> to vector<10x8x64xbf16>
    %cst_23 = arith.constant 0.000000e+00 : f32
    %56 = vector.broadcast %cst_23 : f32 to vector<64x64xf32>
    %57 = vector.extract_strided_slice %53 {offsets = [0, 0, 0], sizes = [8, 8, 64], strides = [1, 1, 1]} : vector<10x8x64xbf16> to vector<8x8x64xbf16>
    %58 = vector.shape_cast %57 : vector<8x8x64xbf16> to vector<64x64xbf16>
    %c0_24 = arith.constant 0 : index
    %c0_25 = arith.constant 0 : index
    %59 = vector.load %arg7[%c0_24, %c0_25] : memref<576x64xbf16, #tpu.memory_space<vmem>>, vector<64x64xbf16>
    %cst_26 = arith.constant dense<0.000000e+00> : vector<64x64xf32>
    %60 = tpu.matmul %58, %59, %cst_26 {dimension_numbers = #tpu.dot_dimension_numbers<[1], [0], [0], [1], [0, 0, 1, 1], [], []>} : vector<64x64xbf16>, vector<64x64xbf16>, vector<64x64xf32> -> vector<64x64xf32>
    %61 = arith.addf %56, %60 : vector<64x64xf32>
    %62 = vector.extract_strided_slice %54 {offsets = [0, 0, 0], sizes = [8, 8, 64], strides = [1, 1, 1]} : vector<10x8x64xbf16> to vector<8x8x64xbf16>
    %63 = vector.shape_cast %62 : vector<8x8x64xbf16> to vector<64x64xbf16>
    %c64 = arith.constant 64 : index
    %c0_27 = arith.constant 0 : index
    %64 = vector.load %arg7[%c64, %c0_27] : memref<576x64xbf16, #tpu.memory_space<vmem>>, vector<64x64xbf16>
    %cst_28 = arith.constant dense<0.000000e+00> : vector<64x64xf32>
    %65 = tpu.matmul %63, %64, %cst_28 {dimension_numbers = #tpu.dot_dimension_numbers<[1], [0], [0], [1], [0, 0, 1, 1], [], []>} : vector<64x64xbf16>, vector<64x64xbf16>, vector<64x64xf32> -> vector<64x64xf32>
    %66 = arith.addf %61, %65 : vector<64x64xf32>
    %67 = vector.extract_strided_slice %55 {offsets = [0, 0, 0], sizes = [8, 8, 64], strides = [1, 1, 1]} : vector<10x8x64xbf16> to vector<8x8x64xbf16>
    %68 = vector.shape_cast %67 : vector<8x8x64xbf16> to vector<64x64xbf16>
    %c128 = arith.constant 128 : index
    %c0_29 = arith.constant 0 : index
    %69 = vector.load %arg7[%c128, %c0_29] : memref<576x64xbf16, #tpu.memory_space<vmem>>, vector<64x64xbf16>
    %cst_30 = arith.constant dense<0.000000e+00> : vector<64x64xf32>
    %70 = tpu.matmul %68, %69, %cst_30 {dimension_numbers = #tpu.dot_dimension_numbers<[1], [0], [0], [1], [0, 0, 1, 1], [], []>} : vector<64x64xbf16>, vector<64x64xbf16>, vector<64x64xf32> -> vector<64x64xf32>
    %71 = arith.addf %66, %70 : vector<64x64xf32>
    %72 = vector.extract_strided_slice %53 {offsets = [1, 0, 0], sizes = [8, 8, 64], strides = [1, 1, 1]} : vector<10x8x64xbf16> to vector<8x8x64xbf16>
    %73 = vector.shape_cast %72 : vector<8x8x64xbf16> to vector<64x64xbf16>
    %c192 = arith.constant 192 : index
    %c0_31 = arith.constant 0 : index
    %74 = vector.load %arg7[%c192, %c0_31] : memref<576x64xbf16, #tpu.memory_space<vmem>>, vector<64x64xbf16>
    %cst_32 = arith.constant dense<0.000000e+00> : vector<64x64xf32>
    %75 = tpu.matmul %73, %74, %cst_32 {dimension_numbers = #tpu.dot_dimension_numbers<[1], [0], [0], [1], [0, 0, 1, 1], [], []>} : vector<64x64xbf16>, vector<64x64xbf16>, vector<64x64xf32> -> vector<64x64xf32>
    %76 = arith.addf %71, %75 : vector<64x64xf32>
    %77 = vector.extract_strided_slice %54 {offsets = [1, 0, 0], sizes = [8, 8, 64], strides = [1, 1, 1]} : vector<10x8x64xbf16> to vector<8x8x64xbf16>
    %78 = vector.shape_cast %77 : vector<8x8x64xbf16> to vector<64x64xbf16>
    %c256 = arith.constant 256 : index
    %c0_33 = arith.constant 0 : index
    %79 = vector.load %arg7[%c256, %c0_33] : memref<576x64xbf16, #tpu.memory_space<vmem>>, vector<64x64xbf16>
    %cst_34 = arith.constant dense<0.000000e+00> : vector<64x64xf32>
    %80 = tpu.matmul %78, %79, %cst_34 {dimension_numbers = #tpu.dot_dimension_numbers<[1], [0], [0], [1], [0, 0, 1, 1], [], []>} : vector<64x64xbf16>, vector<64x64xbf16>, vector<64x64xf32> -> vector<64x64xf32>
    %81 = arith.addf %76, %80 : vector<64x64xf32>
    %82 = vector.extract_strided_slice %55 {offsets = [1, 0, 0], sizes = [8, 8, 64], strides = [1, 1, 1]} : vector<10x8x64xbf16> to vector<8x8x64xbf16>
    %83 = vector.shape_cast %82 : vector<8x8x64xbf16> to vector<64x64xbf16>
    %c320 = arith.constant 320 : index
    %c0_35 = arith.constant 0 : index
    %84 = vector.load %arg7[%c320, %c0_35] : memref<576x64xbf16, #tpu.memory_space<vmem>>, vector<64x64xbf16>
    %cst_36 = arith.constant dense<0.000000e+00> : vector<64x64xf32>
    %85 = tpu.matmul %83, %84, %cst_36 {dimension_numbers = #tpu.dot_dimension_numbers<[1], [0], [0], [1], [0, 0, 1, 1], [], []>} : vector<64x64xbf16>, vector<64x64xbf16>, vector<64x64xf32> -> vector<64x64xf32>
    %86 = arith.addf %81, %85 : vector<64x64xf32>
    %87 = vector.extract_strided_slice %53 {offsets = [2, 0, 0], sizes = [8, 8, 64], strides = [1, 1, 1]} : vector<10x8x64xbf16> to vector<8x8x64xbf16>
    %88 = vector.shape_cast %87 : vector<8x8x64xbf16> to vector<64x64xbf16>
    %c384 = arith.constant 384 : index
    %c0_37 = arith.constant 0 : index
    %89 = vector.load %arg7[%c384, %c0_37] : memref<576x64xbf16, #tpu.memory_space<vmem>>, vector<64x64xbf16>
    %cst_38 = arith.constant dense<0.000000e+00> : vector<64x64xf32>
    %90 = tpu.matmul %88, %89, %cst_38 {dimension_numbers = #tpu.dot_dimension_numbers<[1], [0], [0], [1], [0, 0, 1, 1], [], []>} : vector<64x64xbf16>, vector<64x64xbf16>, vector<64x64xf32> -> vector<64x64xf32>
    %91 = arith.addf %86, %90 : vector<64x64xf32>
    %92 = vector.extract_strided_slice %54 {offsets = [2, 0, 0], sizes = [8, 8, 64], strides = [1, 1, 1]} : vector<10x8x64xbf16> to vector<8x8x64xbf16>
    %93 = vector.shape_cast %92 : vector<8x8x64xbf16> to vector<64x64xbf16>
    %c448 = arith.constant 448 : index
    %c0_39 = arith.constant 0 : index
    %94 = vector.load %arg7[%c448, %c0_39] : memref<576x64xbf16, #tpu.memory_space<vmem>>, vector<64x64xbf16>
    %cst_40 = arith.constant dense<0.000000e+00> : vector<64x64xf32>
    %95 = tpu.matmul %93, %94, %cst_40 {dimension_numbers = #tpu.dot_dimension_numbers<[1], [0], [0], [1], [0, 0, 1, 1], [], []>} : vector<64x64xbf16>, vector<64x64xbf16>, vector<64x64xf32> -> vector<64x64xf32>
    %96 = arith.addf %91, %95 : vector<64x64xf32>
    %97 = vector.extract_strided_slice %55 {offsets = [2, 0, 0], sizes = [8, 8, 64], strides = [1, 1, 1]} : vector<10x8x64xbf16> to vector<8x8x64xbf16>
    %98 = vector.shape_cast %97 : vector<8x8x64xbf16> to vector<64x64xbf16>
    %c512 = arith.constant 512 : index
    %c0_41 = arith.constant 0 : index
    %99 = vector.load %arg7[%c512, %c0_41] : memref<576x64xbf16, #tpu.memory_space<vmem>>, vector<64x64xbf16>
    %cst_42 = arith.constant dense<0.000000e+00> : vector<64x64xf32>
    %100 = tpu.matmul %98, %99, %cst_42 {dimension_numbers = #tpu.dot_dimension_numbers<[1], [0], [0], [1], [0, 0, 1, 1], [], []>} : vector<64x64xbf16>, vector<64x64xbf16>, vector<64x64xf32> -> vector<64x64xf32>
    %101 = arith.addf %96, %100 : vector<64x64xf32>
    %c0_43 = arith.constant 0 : index
    %c0_44 = arith.constant 0 : index
    %c0_45 = arith.constant 0 : index
    %c0_46 = arith.constant 0 : index
    %102 = vector.load %arg9[%c0_43, %c0_44, %c0_45, %c0_46] : memref<1x8x8x32xf32, #tpu.memory_space<vmem>>, vector<1x8x8x32xf32>
    %103 = vector.shape_cast %102 : vector<1x8x8x32xf32> to vector<64x32xf32>
    %104 = arith.truncf %103 : vector<64x32xf32> to vector<64x32xbf16>
    %c0_47 = arith.constant 0 : index
    %c0_48 = arith.constant 0 : index
    %105 = vector.load %arg10[%c0_47, %c0_48] : memref<32x64xbf16, #tpu.memory_space<vmem>>, vector<32x64xbf16>
    %cst_49 = arith.constant dense<0.000000e+00> : vector<64x64xf32>
    %106 = tpu.matmul %104, %105, %cst_49 {dimension_numbers = #tpu.dot_dimension_numbers<[1], [0], [0], [1], [0, 0, 1, 1], [], []>} : vector<64x32xbf16>, vector<32x64xbf16>, vector<64x64xf32> -> vector<64x64xf32>
    %107 = arith.addf %101, %106 : vector<64x64xf32>
    %c0_50 = arith.constant 0 : index
    %c0_51 = arith.constant 0 : index
    %108 = vector.load %arg8[%c0_50, %c0_51] : memref<1x64xf32, #tpu.memory_space<vmem>>, vector<1x64xf32>
    %109 = vector.broadcast %108 : vector<1x64xf32> to vector<64x64xf32>
    %110 = arith.addf %107, %109 : vector<64x64xf32>
    %111 = vector.shape_cast %110 : vector<64x64xf32> to vector<1x8x8x64xf32>
    %c0_52 = arith.constant 0 : index
    %c0_53 = arith.constant 0 : index
    %c0_54 = arith.constant 0 : index
    %c0_55 = arith.constant 0 : index
    %112 = vector.load %arg11[%c0_52, %c0_53, %c0_54, %c0_55] : memref<1x8x8x64xf32, #tpu.memory_space<vmem>>, vector<1x8x8x64xf32>
    tpu.vector_store %arg11[%c0_52, %c0_53, %c0_54, %c0_55], %111 {strides = array<i32>} : memref<1x8x8x64xf32, #tpu.memory_space<vmem>>, vector<1x8x8x64xf32>,
    return
  }
  func.func @transform_0(%arg0: i32, %arg1: i32) -> (i32, i32, i32, i32) {
    %c8_i32 = arith.constant 8 : i32
    %0 = arith.muli %arg1, %c8_i32 : i32
    %c1_i32 = arith.constant 1 : i32
    %1 = arith.subi %0, %c1_i32 : i32
    %c0_i32 = arith.constant 0 : i32
    %2 = arith.maxsi %1, %c0_i32 : i32
    %c0_i32_0 = arith.constant 0 : i32
    %c0_i32_1 = arith.constant 0 : i32
    %c0_i32_2 = arith.constant 0 : i32
    return %arg0, %2, %c0_i32_0, %c0_i32_1 : i32, i32, i32, i32
  }
  func.func @transform_1(%arg0: i32, %arg1: i32) -> (i32, i32, i32, i32) {
    %c0_i32 = arith.constant 0 : i32
    %c0_i32_0 = arith.constant 0 : i32
    %c0_i32_1 = arith.constant 0 : i32
    return %arg0, %arg1, %c0_i32, %c0_i32_0 : i32, i32, i32, i32
  }
  func.func @transform_2(%arg0: i32, %arg1: i32) -> (i32, i32, i32, i32) {
    %c8_i32 = arith.constant 8 : i32
    %0 = arith.muli %arg1, %c8_i32 : i32
    %c8_i32_0 = arith.constant 8 : i32
    %1 = arith.addi %0, %c8_i32_0 : i32
    %c7_i32 = arith.constant 7 : i32
    %2 = arith.minsi %1, %c7_i32 : i32
    %c0_i32 = arith.constant 0 : i32
    %c0_i32_1 = arith.constant 0 : i32
    %c0_i32_2 = arith.constant 0 : i32
    return %arg0, %2, %c0_i32, %c0_i32_1 : i32, i32, i32, i32
  }
  func.func @transform_3(%arg0: i32, %arg1: i32) -> (i32, i32, i32) {
    %c0_i32 = arith.constant 0 : i32
    %c0_i32_0 = arith.constant 0 : i32
    %c0_i32_1 = arith.constant 0 : i32
    return %arg0, %c0_i32, %c0_i32_0 : i32, i32, i32
  }
  func.func @transform_4(%arg0: i32, %arg1: i32) -> (i32, i32, i32) {
    %c0_i32 = arith.constant 0 : i32
    %c0_i32_0 = arith.constant 0 : i32
    %c0_i32_1 = arith.constant 0 : i32
    return %arg0, %c0_i32, %c0_i32_0 : i32, i32, i32
  }
  func.func @transform_5(%arg0: i32, %arg1: i32) -> (i32, i32) {
    %c0_i32 = arith.constant 0 : i32
    %c0_i32_0 = arith.constant 0 : i32
    %c0_i32_1 = arith.constant 0 : i32
    return %c0_i32, %c0_i32_0 : i32, i32
  }
  func.func @transform_6(%arg0: i32, %arg1: i32) -> (i32, i32) {
    %c0_i32 = arith.constant 0 : i32
    %c0_i32_0 = arith.constant 0 : i32
    %c0_i32_1 = arith.constant 0 : i32
    return %c0_i32, %c0_i32_0 : i32, i32
  }
  func.func @transform_7(%arg0: i32, %arg1: i32) -> (i32, i32, i32, i32) {
    %c0_i32 = arith.constant 0 : i32
    %c0_i32_0 = arith.constant 0 : i32
    %c0_i32_1 = arith.constant 0 : i32
    return %arg0, %arg1, %c0_i32, %c0_i32_0 : i32, i32, i32, i32
  }
  func.func @transform_8(%arg0: i32, %arg1: i32) -> (i32, i32) {
    %c0_i32 = arith.constant 0 : i32
    %c0_i32_0 = arith.constant 0 : i32
    %c0_i32_1 = arith.constant 0 : i32
    return %c0_i32, %c0_i32_0 : i32, i32
  }
  func.func @transform_9(%arg0: i32, %arg1: i32) -> (i32, i32, i32, i32) {
    %c0_i32 = arith.constant 0 : i32
    %c0_i32_0 = arith.constant 0 : i32
    %c0_i32_1 = arith.constant 0 : i32
    return %arg0, %arg1, %c0_i32, %c0_i32_0 : i32, i32, i32, i32
  }
}

</mosaic_0001>

<bundles_post_ra>
// kernel: resnet_block_forward.3
= control target key start
LH: loop header
LB: loop body
LE: loop exit
PB: predicated region body
PF: predicated region fallthrough
CT: control target
= control target key end

     0   :  { %8 = vsyncpa [#allocation5], 0  ;;  %s691_s0 = inlined_call_operand.hbm [shape: f32[2,8,8,32], index: 0, kind: input, shape index: {}]   ;;  %s692_s1 = inlined_call_operand.vmem [shape: f32[2,1,32], index: 1, kind: output, shape index: {0}]   ;;  %s693_s2 = inlined_call_operand.vmem [shape: f32[2,1,32], index: 2, kind: output, shape index: {1}]  }
   0x1   :  { %10 = vsyncpa [#allocation5 + $0x1], 0  ;;  %s532_s9 = smov 0   ;;  %s534_s10 = smov 0  }
   0x2   :  { %s536_s11 = smov 0   ;;  %s538_s12 = smov 0  }
   0x3   :  { %s540_s13 = smov 0   ;;  %s542_s14 = smov 0  }
   0x4 LB: > { %s361_s15 = sadd.s32 4294967295, %s511_s14   ;;  %s28_s16 = sadd.s32 1, %s507_s13  ;;  %s511_s14 = sphi %s542_s14, %s16_s14   ;;  %s507_s13 = sphi %s540_s13, %s701_s13   ;;  %s503_s12 = sphi %s538_s12, %s700_s12   ;;  %s499_s11 = sphi %s536_s11, %s699_s11   ;;  %s495_s10 = sphi %s534_s10, %s698_s10   ;;  %s491_s9 = sphi %s532_s9, %s697_s9  }
   0x5   : > { %p30_p0 = scmp.ge.s32.totalorder %s28_s16, 2  ;;  %s37_s17 = sadd.s32 1, %s499_s11 }
   0x6   : > { %p44_p1 = scmp.ne.s32.totalorder %s499_s11, %s495_s10  ;;  %p45_p2 = scmp.eq.s32.totalorder %s511_s14, 0 }
   0x7   : > { %s703_s16 = smov (%p30_p0, %s28_s16), 0  ;;  %p50_p4 = scmp.ne.s32.totalorder %s495_s10, %s491_s9 }
   0x8   : > { %p568_p3 = por %p45_p2, %p44_p1  ;;  %s32_s19 = ssub.s32 %s507_s13, %s703_s16 }
   0x9   : > { %p51_p5 = scmp.eq.s32.totalorder %s361_s15, 0  ;;  %p35_p6 = scmp.eq.s32.totalorder %s32_s19, 0 }
   0xa   : > { %p379_p8 = scmp.lt.s32.totalorder %s511_s14, 2  ;;  %s126_s22 = sand.u32 1, %s499_s11  }
   0xb   : > { %p575_p7 = por %p51_p5, %p50_p4  ;;  %s372_s23 = sshll.u32 %s507_s13, 10 }
   0xc   : > { %s581_s21 = scalar_select %p35_p6, %s499_s11, %s37_s17  }
   0xd   : > { %s365_s24 = sshll.u32 %s126_s22, 6  ;;  %s588_s27 = scalar_lea.hbm %s691_s0, %s372_s23 }
   0xe   : > { %s130_s28 = scalar_lea.vmem [#allocation4], %s365_s24  ;;  %p592_p9 = pnand %p379_p8, %p568_p3 }
   0xf   : > { %s139_s29 = sshll.u32 %s130_s28, 4  ;;  %s598_s3 = scalar_lea.sflag [#allocation5], %s126_s22  ;;  %s596_s29 = int_to_ptr.vmem [resolvable:$true] %s139_s29 }
  0x10   : > { %s431_s4 = scalar_lea.hbm %s588_s27, 1024  ;;  %p433_p11 = pneg %p592_p9 }
  0x11   : > { %p432_p10 = scmp.ne.s32.totalorder %s588_s27, %s431_s4  ;;  %s436_s7 = scalar_lea.hbm %s691_s0, 2048 }
  0x12   : > { %p437_p0 = scmp.lt.u32.totalorder %s588_s27, %s691_s0  ;;  %p438_p1 = scmp.lt.u32.totalorder %s436_s7, %s431_s4 }
  0x13   : > { %p434_p12 = pnand %p433_p11, %p432_p10  ;;  %p440_p3 = scmp.lt.u32.totalorder %s431_s4, %s588_s27 }
  0x14   : > { %p439_p2 = por %p438_p1, %p437_p0 }
  0x15   : > { %p435_p13 = pneg %p434_p12 }
  0x16   : > { %p441_p4 = por %p440_p3, %p439_p2 }
  0x18   : > { %p442_p5 = pnand %p441_p4, %p435_p13 }
  0x1a   : > { %445 = shalt.err (!%p442_p5)
}
  0x1b   : > { %s446_s15 = scalar_lea.vmem %s596_s29, 1024  ;;  %s513_s17 = smov [#allocation4]  }
  0x1c   : > { %p447_p6 = scmp.ne.s32.totalorder %s596_s29, %s446_s15  ;;  %s451_s18 = sshll.u32 %s513_s17, 4  ;;  %s452_s18 = int_to_ptr.vmem [resolvable:$false] %s451_s18 }
  0x1d   : > { %s453_s19 = scalar_lea.vmem %s452_s18, 2048  ;;  %p454_p12 = scmp.lt.s32.totalorder %s596_s29, %s452_s18 }
  0x1e   : > { %p449_p8 = pnand %p447_p6, %p433_p11  ;;  %p455_p0 = scmp.lt.s32.totalorder %s453_s19, %s446_s15 }
  0x20   : > { %p450_p10 = pneg %p449_p8  ;;  %p456_p1 = por %p455_p0, %p454_p12 }
  0x22   : > { %p457_p2 = pnand %p456_p1, %p450_p10 }
  0x24   : > { %460 = shalt.err (!%p457_p2)
}
  0x25   : > { %s514_s22 = smov 128   ;;  %s515_s23 = smov 8  }
  0x26   : > { %378 = dma.hbm_to_vmem [thread:$0]  (!%p592_p9), %s588_s27, 1024, %s596_s29, %s598_s3, %s514_s22, %s514_s22, %s515_s23  }
  0x27   : > { %p368_p11 = scmp.ge.s32.totalorder %s511_s14, 1  ;;  %p147_p13 = scmp.lt.s32.totalorder %s511_s14, 3 }
  0x29   : > { %p148_p3 = pnand %p368_p11, %p147_p13 }
  0x2a   : > { %s153_s24 = sand.u32 (!%p148_p3), 1, %s495_s10  }
  0x2b   : > { %151 = sbr.rel (%p148_p3) target bundleno = 93 (0x5d), region = 24  ;;  %s369_s25 = sshll.u32 (!%p148_p3), %s153_s24, 6 }
  0x2c   : > { %s154_s26 = scalar_lea.sflag (!%p148_p3), [#allocation5], %s153_s24  ;;  %s629_s28 = scalar_lea.vmem (!%p148_p3), [#allocation4], %s369_s25 }
  0x32   : > { %486 = dma.done.wait (%p575_p7), %s154_s26, 1024  }
  0x33   : > { %488 = vsyncadd (%p575_p7), %s154_s26, 4294966272  ;;  %vm198_vm0 = vcmask 253952   ;;  %v516_v0 = vmov 0.0   ;;  %vm202_vm1 = vcmask 261120   ;;  %v186_v1 = vld [vmem:[%s629_s28] sm:$0xff]  ;;  %v187_v2 = vld [vmem:[%s629_s28 + $0x8] sm:$0xff] }
  0x34   : > { %199 = vst.msk [vmem:[#allocation2] sm:$0x1] %vm198_vm0, %v516_v0  ;;  %200 = vst.msk [vmem:[#allocation3] sm:$0x1] %vm198_vm0, %v516_v0  ;;  %v188_v3 = vld [vmem:[%s629_s28 + $0x10] sm:$0xff]  ;;  %v189_v4 = vld [vmem:[%s629_s28 + $0x18] sm:$0xff]  ;;  %v228_v8 = vmul.f32 %v186_v1, %v186_v1  ;;  %v229_v11 = vmul.f32 %v187_v2, %v187_v2 }
  0x35   : > { %v203_v5 = vsel %vm202_vm1, %v186_v1, 0.0  ;;  %v204_v6 = vsel %vm202_vm1, %v187_v2, 0.0  ;;  %v206_v7 = vsel %vm202_vm1, %v188_v3, 0.0  ;;  %v190_v9 = vld [vmem:[%s629_s28 + $0x20] sm:$0xff]  ;;  %v208_v12 = vsel %vm202_vm1, %v189_v4, 0.0  ;;  %v191_v14 = vld [vmem:[%s629_s28 + $0x28] sm:$0xff] }
  0x36   : > { %v205_v10 = vadd.f32 %v204_v6, %v203_v5  ;;  %v230_v13 = vmul.f32 %v188_v3, %v188_v3  ;;  %v231_v16 = vmul.f32 %v189_v4, %v189_v4  ;;  %v210_v17 = vsel %vm202_vm1, %v190_v9, 0.0  ;;  %v192_v21 = vld [vmem:[%s629_s28 + $0x30] sm:$0xff]  ;;  %v193_v28 = vld [vmem:[%s629_s28 + $0x38] sm:$0xff]  ;;  %p180_p7 = scmp.lt.s32.totalorder %s503_s12, 1 }
  0x37   : > { %v232_v18 = vmul.f32 %v190_v9, %v190_v9  ;;  %v236_v19 = vsel %vm202_vm1, %v228_v8, 0.0  ;;  %v237_v20 = vsel %vm202_vm1, %v229_v11, 0.0  ;;  %v212_v25 = vsel %vm202_vm1, %v191_v14, 0.0 }
  0x38   : > { %v207_v15 = vadd.f32 %v206_v7, %v205_v10  ;;  %v238_v23 = vadd.f32 %v237_v20, %v236_v19  ;;  %v239_v24 = vsel %vm202_vm1, %v230_v13, 0.0  ;;  %v233_v26 = vmul.f32 %v191_v14, %v191_v14  ;;  %s705_s12 = smov (!%p180_p7, %s503_s12), 1 }
  0x39   : > { %v241_v27 = vsel %vm202_vm1, %v231_v16, 0.0  ;;  %v214_v31 = vsel %vm202_vm1, %v192_v21, 0.0  ;;  %v234_v32 = vmul.f32 %v192_v21, %v192_v21  ;;  %v243_v33 = vsel %vm202_vm1, %v232_v18, 0.0  ;;  %s182_s29 = scalar_lea.vmem %s692_s1, %s705_s12  ;;  %s185_s4 = scalar_lea.vmem %s693_s2, %s705_s12 }
  0x3a   : > { %v209_v22 = vadd.f32 %v208_v12, %v207_v15  ;;  %v240_v30 = vadd.f32 %v239_v24, %v238_v23  ;;  %v216_v36 = vsel %vm202_vm1, %v193_v28, 0.0  ;;  %v235_v37 = vmul.f32 %v193_v28, %v193_v28 }
  0x3b   : > { %v245_v38 = vsel %vm202_vm1, %v233_v26, 0.0  ;;  %v247_v41 = vsel %vm202_vm1, %v234_v32, 0.0  ;;  %v201_v55 = vld [vmem:[#allocation2] sm:$0x1]  ;;  %v227_v60 = vld [vmem:[#allocation3] sm:$0x1] }
  0x3c   : > { %v211_v29 = vadd.f32 %v210_v17, %v209_v22  ;;  %v242_v35 = vadd.f32 %v241_v27, %v240_v30  ;;  %v249_v44 = vsel %vm202_vm1, %v235_v37, 0.0 }
  0x3e   : > { %v213_v34 = vadd.f32 %v212_v25, %v211_v29  ;;  %v244_v40 = vadd.f32 %v243_v33, %v242_v35 }
  0x40   : > { %v215_v39 = vadd.f32 %v214_v31, %v213_v34  ;;  %v246_v43 = vadd.f32 %v245_v38, %v244_v40 }
  0x42   : > { %v217_v42 = vadd.f32 %v216_v36, %v215_v39  ;;  %v248_v46 = vadd.f32 %v247_v41, %v246_v43 }
  0x44   : > { %v218_v45 = vrot.slane %v217_v42, 4  ;;  %v250_v48 = vadd.f32 %v249_v44, %v248_v46 }
  0x46   : > { %v219_v47 = vadd.f32 %v218_v45, %v217_v42  ;;  %v251_v50 = vrot.slane %v250_v48, 4 }
  0x48   : > { %v220_v49 = vrot.slane %v219_v47, 2  ;;  %v252_v52 = vadd.f32 %v251_v50, %v250_v48 }
  0x4a   : > { %v221_v51 = vadd.f32 %v220_v49, %v219_v47  ;;  %v253_v54 = vrot.slane %v252_v52, 2 }
  0x4c   : > { %v222_v53 = vrot.slane %v221_v51, 1  ;;  %v254_v57 = vadd.f32 %v253_v54, %v252_v52 }
  0x4e   : > { %v223_v56 = vadd.f32 %v222_v53, %v221_v51  ;;  %v255_v59 = vrot.slane %v254_v57, 1 }
  0x50   : > { %v224_v58 = vadd.f32 %v223_v56, %v201_v55  ;;  %v256_v61 = vadd.f32 %v255_v59, %v254_v57 }
  0x52   : > { %226 = vst.msk [vmem:[#allocation2] sm:$0x1] %vm198_vm0, %v224_v58  ;;  %v257_v62 = vadd.f32 %v256_v61, %v227_v60 }
  0x54   : > { %258 = vst.msk [vmem:[#allocation3] sm:$0x1] %vm198_vm0, %v257_v62 }
  0x59   : > { %v262_v63 = vld [vmem:[#allocation2] sm:$0x1] }
  0x5a   : > { %263 = vst.msk [vmem:[%s182_s29] sm:$0x1] %vm198_vm0, %v262_v63 }
  0x5b   : > { %v264_v0 = vld [vmem:[#allocation3] sm:$0x1] }
  0x5c   : > { %265 = vst.msk [vmem:[%s185_s4] sm:$0x1] %vm198_vm0, %v264_v0 }
  0x5d PF: > { %s16_s14 = sadd.s32 1, %s511_s14   ;;  %s697_s9 = smov %s495_s10 }
  0x5e   : > { %p13_p9 = scmp.ge.s32.totalorder %s16_s14, 4   ;;  %s698_s10 = smov %s499_s11 }
  0x5f   : > { %s699_s11 = smov %s581_s21  ;;  %s700_s12 = smov %s507_s13 }
  0x60   : > { %s701_s13 = smov %s703_s16  ;;  %15 = sbr.rel (!%p13_p9) target bundleno = 4 (0x4), region = 84 }
  0x67   :  { %295 = vsyncpa [#allocation5], 1 }
  0x68   :  { %297 = vsyncpa [#allocation5 + $0x1], 1 }

// kernel: resnet_block_forward.4
= control target key start
LH: loop header
LB: loop body
LE: loop exit
PB: predicated region body
PF: predicated region fallthrough
CT: control target
= control target key end

     0   :  { %s2621_s28 = smov 0   ;;  %s2623_s29 = smov 0   ;;  %s2973_s0 = inlined_call_operand.vmem [shape: f32[2,8,8,32], index: 0, kind: input, shape index: {}, may-alias: {0,1,2}]   ;;  %s2974_s1 = inlined_call_operand.vmem [shape: f32[2,8,8,32], index: 1, kind: input, shape index: {}, may-alias: {0,1,2}]   ;;  %s2975_s2 = inlined_call_operand.vmem [shape: f32[2,8,8,32], index: 2, kind: input, shape index: {}, may-alias: {0,1,2}]   ;;  %s2976_s3 = inlined_call_operand.vmem [shape: f32[2,1,32], index: 3, kind: input, shape index: {}]   ;;  %s2977_s4 = inlined_call_operand.vmem [shape: f32[2,1,32], index: 4, kind: input, shape index: {}]   ;;  %s2978_s5 = inlined_call_operand.vmem [shape: bf16[288,64], index: 5, kind: input, shape index: {}]   ;;  %s2979_s6 = inlined_call_operand.vmem [shape: f32[2,1,64], index: 6, kind: input, shape index: {}]   ;;  %s2980_s7 = inlined_call_operand.vmem [shape: bf16[2,8,8,64], index: 7, kind: output, shape index: {0}]   ;;  %s2981_s8 = inlined_call_operand.vmem [shape: f32[2,1,1,64], index: 8, kind: output, shape index: {1}]   ;;  %s2982_s9 = inlined_call_operand.vmem [shape: f32[2,1,1,64], index: 9, kind: output, shape index: {2}]  }
   0x1   :  { %s2625_s30 = smov 0  }
   0x2 LB: > { %s32_s10 = sadd.s32 1, %s2563_s29  ;;  %p2088_p0 = scmp.ge.s32.totalorder %s2567_s30, 1  ;;  %s2567_s30 = sphi %s2625_s30, %s20_s30   ;;  %s2563_s29 = sphi %s2623_s29, %s2984_s29   ;;  %s2559_s28 = sphi %s2621_s28, %s2983_s28  }
   0x3   : > { %p34_p1 = scmp.ge.s32.totalorder %s32_s10, 2  ;;  %p403_p2 = scmp.lt.s32.totalorder %s2567_s30, 3 }
   0x5   : > { %s2986_s10 = smov (%p34_p1, %s32_s10), 0  ;;  %p404_p3 = pnand %p2088_p0, %p403_p2 }
   0x6   : > { %v2642_v0 = vld [vmem:[%s2978_s5 + $0x40] sm:$0xff] (!%p404_p3)   ;;  %p509_p4 = scmp.lt.s32.totalorder (!%p404_p3), %s2559_s28, 1  ;;  %v2496_v1 = vld [vmem:[%s2978_s5 + $0x10] sm:$0xff] (!%p404_p3)   ;;  %v2651_v2 = vld [vmem:[%s2978_s5 + $0x48] sm:$0xff] (!%p404_p3)   ;;  %vm832_vm0 = vcmask (!%p404_p3), 261120   ;;  %vm751_vm1 = vcmask (!%p404_p3), 1046528  }
   0x7   : > { %407 = sbr.rel (%p404_p3) target bundleno = 373 (0x175), region = 48  ;;  %2341 = vmatprep.subr.bf16.mxu0 (!%p404_p3), %v2642_v0  ;;  %2293 = vmatprep.subr.bf16.mxu1 (!%p404_p3), %v2496_v1  ;;  %v2498_v3 = vld [vmem:[%s2978_s5 + $0x18] sm:$0xff] (!%p404_p3)   ;;  %v2668_v4 = vld [vmem:[%s2978_s5] sm:$0xff] (!%p404_p3)   ;;  %v2681_v17 = vld [vmem:[%s2978_s5 + $0x50] sm:$0xff] (!%p404_p3)   ;;  %vm720_vm2 = vcmask (!%p404_p3), 1040384   ;;  %vm1793_vm3 = vcmask (!%p404_p3), 519168  }
   0x8   : > { %2342 = vmatpush3.bf16.msra.mxu0 (!%p404_p3), %v2642_v0  ;;  %2294 = vmatpush3.bf16.msra.mxu1 (!%p404_p3), %v2496_v1  ;;  %vm1810_vm4 = vcmask (!%p404_p3), 523264   ;;  %vm1832_vm5 = vcmask (!%p404_p3), 516096  }
   0x9   : > { %2343 = vmatprep.subr.bf16.mxu0 (!%p404_p3), %v2651_v2  ;;  %2295 = vmatprep.subr.bf16.mxu1 (!%p404_p3), %v2498_v3 }
   0xc   : > { %2344 = vmatpush3.bf16.msra.mxu0 (!%p404_p3), %v2651_v2  ;;  %2296 = vmatpush3.bf16.msra.mxu1 (!%p404_p3), %v2498_v3 }
   0xd   : > { %2305 = vmatprep.subr.bf16.mxu1 (!%p404_p3), %v2668_v4  ;;  %2353 = vmatprep.subr.bf16.mxu0 (!%p404_p3), %v2681_v17 }
   0xe   : > { %s2988_s28 = smov (!%p509_p4, %s2559_s28), 1 }
   0xf   : > { %s2202_s19 = sshll.u32 %s2988_s28, 6  ;;  %s536_s22 = scalar_lea.vmem %s2976_s3, %s2988_s28 }
  0x10   : > { %s516_s26 = scalar_lea.vmem %s2974_s1, %s2202_s19  ;;  %s539_s11 = scalar_lea.vmem %s2977_s4, %s2988_s28  ;;  %v2097_v5 = vld [vmem:[%s536_s22] ss:$0 sm:$0xff] }
  0x11   : > { %v2098_v6 = vld [vmem:[%s539_s11] ss:$0 sm:$0xff]  ;;  %v596_v8 = vld [vmem:[%s516_s26 + $0x8] sm:$0xff]  ;;  %v597_v11 = vld [vmem:[%s516_s26 + $0x10] sm:$0xff]  ;;  %s542_s21 = scalar_lea.vmem %s2979_s6, %s2988_s28  ;;  %s2205_s22 = sshll.u32 %s2988_s28, 5 }
  0x12   : > { %v595_v7 = vld [vmem:[%s516_s26] sm:$0xff]  ;;  %v604_v10 = vmul.f32 %v2097_v5, %v596_v8  ;;  %v598_v12 = vld [vmem:[%s516_s26 + $0x18] sm:$0xff]  ;;  %v605_v14 = vmul.f32 %v2097_v5, %v597_v11  ;;  %v600_v25 = vld [vmem:[%s516_s26 + $0x28] sm:$0xff]  ;;  %v2569_v8 = vmov 0.0|0.0   ;;  %v2570_v11 = vmov 0.0   ;;  %s2915_s0 = scalar_lea.vmem %s2980_s7, %s2205_s22  ;;  %s558_s27 = scalar_lea.vmem %s2981_s8, %s2988_s28 }
  0x13   : > { %v603_v9 = vmul.f32 %v2097_v5, %v595_v7  ;;  %v602_v13 = vld [vmem:[%s516_s26 + $0x38] sm:$0xff]  ;;  %v606_v15 = vmul.f32 %v2097_v5, %v598_v12  ;;  %v599_v20 = vld [vmem:[%s516_s26 + $0x20] sm:$0xff]  ;;  %v601_v28 = vld [vmem:[%s516_s26 + $0x30] sm:$0xff]  ;;  %v608_v29 = vmul.f32 %v2097_v5, %v600_v25  ;;  %v700_v12 = vrot.slane %v2570_v11, 7  ;;  %s564_s12 = scalar_lea.vmem %s2982_s9, %s2988_s28 }
  0x14   : > { %v610_v16 = vmul.f32 %v2097_v5, %v602_v13  ;;  %v612_v19 = vadd.f32 %v2098_v6, %v604_v10  ;;  %v613_v21 = vadd.f32 %v2098_v6, %v605_v14  ;;  %v607_v24 = vmul.f32 %v2097_v5, %v599_v20 }
  0x15   : > { %v611_v18 = vadd.f32 %v2098_v6, %v603_v9  ;;  %v2684_v22 = vadd.f32 %v2098_v6, %v606_v15  ;;  %v609_v34 = vmul.f32 %v2097_v5, %v601_v28  ;;  %v2693_v35 = vadd.f32 %v2098_v6, %v608_v29  ;;  %v2501_v15 = vld [vmem:[%s2978_s5 + $0x58] sm:$0xff]  }
  0x16   : > { %v2686_v23 = vadd.f32 %v2098_v6, %v610_v16  ;;  %v2101_v27 = vmul.f32 -1.442695, %v612_v19  ;;  %v2102_v30 = vmul.f32 -1.442695, %v613_v21  ;;  %v2691_v33 = vadd.f32 %v2098_v6, %v607_v24 }
  0x17   : > { %v2100_v26 = vmul.f32 -1.442695, %v611_v18  ;;  %v2103_v31 = vmul.f32 -1.442695, %v2684_v22  ;;  %v2696_v37 = vadd.f32 %v2098_v6, %v609_v34  ;;  %v2105_v38 = vmul.f32 -1.442695, %v2693_v35 }
  0x18   : > { %v2107_v32 = vmul.f32 -1.442695, %v2686_v23  ;;  %v2104_v36 = vmul.f32 -1.442695, %v2691_v33 }
  0x19   : > { %2513 = vpow2.f32 %v2100_v26  ;;  %v2106_v39 = vmul.f32 -1.442695, %v2696_v37 }
  0x1a   : > { %2515 = vpow2.f32 %v2101_v27 }
  0x1b   : > { %2517 = vpow2.f32 %v2102_v30 }
  0x1c   : > { %2519 = vpow2.f32 %v2103_v31  ;;  %v2503_v31 = vld [vmem:[%s2978_s5 + $0x60] sm:$0xff]  }
  0x1d   : > { %2521 = vpow2.f32 %v2107_v32  ;;  %v2759_v32 = vsel %vm720_vm2, 0.0, %v700_v12  ;;  %v2509_v12 = vld [vmem:[%s2978_s5 + $0x78] sm:$0xff]  }
  0x1e   : > { %2523 = vpow2.f32 %v2104_v36 }
  0x1f   : > { %2525 = vpow2.f32 %v2105_v38 }
  0x20   : > { %2527 = vpow2.f32 %v2106_v39 }
  0x23   : > { %v2514_v40 = vpop.eup %2513 }
  0x24   : > { %v2516_v41 = vpop.eup %2515  ;;  %v643_v42 = vadd.f32 1.0, %v2514_v40 }
  0x25   : > { %v2518_v43 = vpop.eup %2517  ;;  %v644_v44 = vadd.f32 1.0, %v2516_v41 }
  0x26   : > { %v2520_v45 = vpop.eup %2519  ;;  %2529 = vrcp.f32 %v643_v42  ;;  %v645_v46 = vadd.f32 1.0, %v2518_v43 }
  0x27   : > { %v2522_v47 = vpop.eup %2521  ;;  %2531 = vrcp.f32 %v644_v44  ;;  %v646_v48 = vadd.f32 1.0, %v2520_v45 }
  0x28   : > { %v2524_v49 = vpop.eup %2523  ;;  %2533 = vrcp.f32 %v645_v46  ;;  %v650_v54 = vadd.f32 1.0, %v2522_v47 }
  0x29   : > { %v2526_v50 = vpop.eup %2525  ;;  %2535 = vrcp.f32 %v646_v48  ;;  %v647_v51 = vadd.f32 1.0, %v2524_v49 }
  0x2a   : > { %v2528_v52 = vpop.eup %2527  ;;  %v648_v53 = vadd.f32 1.0, %v2526_v50 }
  0x2b   : > { %2537 = vrcp.f32 %v647_v51  ;;  %v649_v55 = vadd.f32 1.0, %v2528_v52  ;;  %v2505_v51 = vld [vmem:[%s2978_s5 + $0x68] sm:$0xff]  }
  0x2c   : > { %2539 = vrcp.f32 %v648_v53 }
  0x2d   : > { %2541 = vrcp.f32 %v649_v55 }
  0x2e   : > { %2543 = vrcp.f32 %v650_v54 }
  0x30   : > { %v2530_v56 = vpop.eup %2529 }
  0x31   : > { %v2532_v57 = vpop.eup %2531  ;;  %v667_v58 = vmul.f32 %v2530_v56, %v611_v18 }
  0x32   : > { %v2534_v59 = vpop.eup %2533  ;;  %v2700_v60 = vmul.f32 %v2532_v57, %v612_v19 }
  0x33   : > { %v2536_v61 = vpop.eup %2535  ;;  %v2702_v62 = vmul.f32 %v2534_v59, %v613_v21  ;;  %v773_v63 = vpack.c.bf16 %v667_v58, %v667_v58  ;;  %v732_v1 = vrot.slane %v667_v58, 1  ;;  %v701_v19 = vrot.slane %v667_v58, 7  ;;  %v2502_v21 = vld [vmem:[%s2978_s5 + $0x8] sm:$0xff]  }
  0x34   : > { %v2221_v3 = vpack.c.bf16 %v2700_v60, %v667_v58  ;;  %v2706_v5 = vmul.f32 %v2536_v61, %v2684_v22  ;;  %v733_v6 = vrot.slane %v2700_v60, 1  ;;  %v731_v61 = vrot.slane %v2570_v11, 1 }
  0x35   : > { %v2538_v7 = vpop.eup %2537  ;;  %v2109_v9 = vcombine.low %v2569_v8, %v773_v63  ;;  %v2712_v10 = vpack.c.bf16 %v2702_v62, %v2700_v60  ;;  %v2725_v18 = vsel %vm751_vm1, %v732_v1, 0.0  ;;  %v734_v28 = vrot.slane %v2702_v62, 1 }
  0x36   : > { %v2540_v13 = vpop.eup %2539  ;;  %2345 = vmatprep.mubr.msk.bf16.mxu0 %vm832_vm0, %v2221_v3  ;;  %v2222_v14 = vpack.c.bf16 %v2706_v5, %v2702_v62  ;;  %v2722_v16 = vmul.f32 %v2538_v7, %v2691_v33  ;;  %v2732_v22 = vsel %vm751_vm1, %v733_v6, 0.0  ;;  %v735_v29 = vrot.slane %v2706_v5, 1  ;;  %v2508_v6 = vld [vmem:[%s2978_s5 + $0x30] sm:$0xff]  }
  0x37   : > { %v2542_v20 = vpop.eup %2541  ;;  %2297 = vmatprep.mubr.msk.bf16.mxu1 %vm832_vm0, %v2109_v9  ;;  %v2742_v25 = vmul.f32 %v2540_v13, %v2693_v35  ;;  %v2225_v30 = vpack.c.bf16 %v2732_v22, %v2725_v18  ;;  %v702_v35 = vrot.slane %v2700_v60, 7  ;;  %v755_v38 = vsel %vm751_vm1, %v734_v28, 0.0  ;;  %v2506_v60 = vld [vmem:[%s2978_s5 + $0x28] sm:$0xff]  }
  0x38   : > { %2346 = vmatmul.mubr.msk.bf16.vlgmr.msra.gmra.mrb[0].mxu0 %vm832_vm0, %v2222_v14  ;;  %2298 = vmatmul.mubr.msk.bf16.vlgmr.msra.gmra.mrb[0].mxu1 %vm832_vm0, %v2712_v10  ;;  %v2739_v24 = vpack.c.bf16 %v2722_v16, %v2706_v5  ;;  %v2745_v26 = vmul.f32 %v2542_v20, %v2696_v37  ;;  %v2544_v27 = vpop.eup %2543  ;;  %v736_v33 = vrot.slane %v2722_v16, 1  ;;  %v756_v39 = vsel %vm751_vm1, %v735_v29, 0.0 }
  0x39   : > { %2306 = vmatpush3.bf16.msra.mxu1 %v2668_v4  ;;  %2354 = vmatpush3.bf16.msra.mxu0 %v2681_v17  ;;  %v2762_v4 = vsel %vm720_vm2, 0.0, %v701_v19  ;;  %v2504_v17 = vld [vmem:[%s2978_s5 + $0x20] sm:$0xff]   ;;  %v737_v34 = vrot.slane %v2742_v25, 1  ;;  %v2772_v36 = vmul.f32 %v2544_v27, %v2686_v23  ;;  %v703_v41 = vrot.slane %v2702_v62, 7  ;;  %v2507_v62 = vld [vmem:[%s2978_s5 + $0x70] sm:$0xff]   ;;  %v2512_v27 = vld [vmem:[%s2978_s5 + $0x88] sm:$0xff]  }
  0x3a   : > { %2355 = vmatprep.subr.bf16.mxu0 %v2501_v15  ;;  %2301 = vmatprep.mubr.msk.bf16.mxu1 %vm832_vm0, %v2739_v24  ;;  %v2776_v37 = vpack.c.bf16 %v2745_v26, %v2742_v25  ;;  %v2209_v40 = vpack.c.bf16 %v2762_v4, %v2759_v32  ;;  %v757_v23 = vsel %vm751_vm1, %v736_v33, 0.0  ;;  %v704_v43 = vrot.slane %v2706_v5, 7  ;;  %v2511_v19 = vld [vmem:[%s2978_s5 + $0x80] sm:$0xff]  }
  0x3b   : > { %2307 = vmatprep.subr.bf16.mxu1 %v2502_v21  ;;  %2357 = vmatprep.mubr.msk.bf16.mxu0 %vm832_vm0, %v2225_v30  ;;  %v2785_v42 = vsel %vm751_vm1, %v737_v34, 0.0  ;;  %v705_v44 = vrot.slane %v2722_v16, 7  ;;  %v2226_v45 = vpack.c.bf16 %v756_v39, %v755_v38  ;;  %v2792_v46 = vsel %vm720_vm2, 0.0, %v702_v35 }
  0x3c   : > { %v2796_v47 = vsel %vm720_vm2, 0.0, %v703_v41  ;;  %v2227_v48 = vpack.c.bf16 %v2785_v42, %v757_v23  ;;  %v738_v49 = vrot.slane %v2745_v26, 1  ;;  %v739_v50 = vrot.slane %v2772_v36, 1 }
  0x3d   : > { %2356 = vmatpush3.bf16.msra.mxu0 %v2501_v15  ;;  %2308 = vmatpush3.bf16.msra.mxu1 %v2502_v21  ;;  %v2805_v52 = vsel %vm720_vm2, 0.0, %v704_v43  ;;  %v2808_v53 = vsel %vm720_vm2, 0.0, %v705_v44  ;;  %v2210_v54 = vpack.c.bf16 %v2796_v47, %v2792_v46  ;;  %v706_v57 = vrot.slane %v2742_v25, 7 }
  0x3e   : > { %2365 = vmatprep.subr.bf16.mxu0 %v2503_v31  ;;  %2317 = vmatprep.subr.bf16.mxu1 %v2504_v17  ;;  %v759_v55 = vsel %vm751_vm1, %v738_v49, 0.0  ;;  %v2816_v56 = vsel %vm751_vm1, %v739_v50, 0.0  ;;  %v707_v58 = vrot.slane %v2745_v26, 7  ;;  %v2211_v59 = vpack.c.bf16 %v2808_v53, %v2805_v52 }
  0x3f   : > { %v2228_v63 = vpack.c.bf16 %v2816_v56, %v759_v55  ;;  %v727_v1 = vsel %vm720_vm2, 0.0, %v706_v57  ;;  %v2835_v5 = vsel %vm751_vm1, %v731_v61, 0.0  ;;  %v708_v11 = vrot.slane %v2772_v36, 7 }
  0x40   : > { %2302 = vmatmul.mubr.msk.bf16.gmra.mrb[4].mxu1 %vm832_vm0, %v2776_v37  ;;  %v728_v3 = vsel %vm720_vm2, 0.0, %v707_v58  ;;  %v2213_v9 = vpack.c.bf16 %v2725_v18, %v2835_v5  ;;  %v2214_v13 = vpack.c.bf16 %v755_v38, %v2732_v22  ;;  %v2215_v15 = vpack.c.bf16 %v757_v23, %v756_v39  ;;  %v2510_v18 = vld [vmem:[%s2978_s5 + $0x38] sm:$0xff]  }
  0x41   : > { %2309 = vmatprep.mubr.msk.bf16.mxu1 %vm832_vm0, %v2209_v40  ;;  %v2212_v7 = vpack.c.bf16 %v728_v3, %v727_v1  ;;  %v729_v14 = vsel %vm720_vm2, 0.0, %v708_v11  ;;  %v2216_v21 = vpack.c.bf16 %v759_v55, %v2785_v42  ;;  %v2217_v22 = vpack.c.bf16 %v2792_v46, %v2762_v4 }
  0x42   : > { %v2229_v20 = vpack.c.bf16 %v2759_v32, %v729_v14  ;;  %v780_v28 = vpack.c.bf16 %v2772_v36, %v2772_v36  ;;  %v2218_v29 = vpack.c.bf16 %v2805_v52, %v2796_v47 }
  0x44   : > { %2358 = vmatmul.mubr.msk.bf16.vlgmr.msra.gmra.mrb[0].mxu0 %vm832_vm0, %v2226_v45  ;;  %v2176_v30 = vcombine.low %v780_v28, %v2569_v8  ;;  %v2223_v8 = vpack.c.bf16 %v2742_v25, %v2722_v16 }
  0x45   : > { %2366 = vmatpush3.bf16.msra.mxu0 %v2503_v31  ;;  %2361 = vmatprep.mubr.msk.bf16.mxu0 %vm832_vm0, %v2227_v48  ;;  %v2224_v31 = vpack.c.bf16 %v2772_v36, %v2745_v26 }
  0x46   : > { %2367 = vmatprep.subr.bf16.mxu0 %v2505_v51 }
  0x48   : > { %2310 = vmatmul.mubr.msk.bf16.vlgmr.msra.gmra.mrb[0].mxu1 %vm832_vm0, %v2210_v54 }
  0x49   : > { %2318 = vmatpush3.bf16.msra.mxu1 %v2504_v17  ;;  %2368 = vmatpush3.bf16.msra.mxu0 %v2505_v51  ;;  %v2908_v17 = vld [vmem:[%s542_s21] ss:$0 sm:$0xff] }
  0x4a   : > { %2313 = vmatprep.mubr.msk.bf16.mxu1 %vm832_vm0, %v2211_v59  ;;  %2319 = vmatprep.subr.bf16.mxu1 %v2506_v60 }
  0x4b   : > { %2377 = vmatprep.subr.bf16.mxu0 %v2507_v62 }
  0x4c   : > { %2362 = vmatmul.mubr.msk.bf16.gmra.mrb[4].mxu0 %vm832_vm0, %v2228_v63 }
  0x4d   : > { %2320 = vmatpush3.bf16.msra.mxu1 %v2506_v60  ;;  %2369 = vmatprep.mubr.msk.bf16.mxu0 %vm832_vm0, %v2210_v54 }
  0x4e   : > { %2329 = vmatprep.subr.bf16.mxu1 %v2508_v6 }
  0x50   : > { %2314 = vmatmul.mubr.msk.bf16.gmra.mrb[4].mxu1 %vm832_vm0, %v2212_v7 }
  0x51   : > { %2321 = vmatprep.mubr.msk.bf16.mxu1 %vm832_vm0, %v2213_v9 }
  0x54   : > { %2370 = vmatmul.mubr.msk.bf16.vlgmr.msra.gmra.mrb[0].mxu0 %vm832_vm0, %v2211_v59 }
  0x55   : > { %2378 = vmatpush3.bf16.msra.mxu0 %v2507_v62  ;;  %2373 = vmatprep.mubr.msk.bf16.mxu0 %vm832_vm0, %v2212_v7 }
  0x56   : > { %2379 = vmatprep.subr.bf16.mxu0 %v2509_v12 }
  0x58   : > { %2322 = vmatmul.mubr.msk.bf16.vlgmr.msra.gmra.mrb[0].mxu1 %vm832_vm0, %v2214_v13 }
  0x59   : > { %2330 = vmatpush3.bf16.msra.mxu1 %v2508_v6  ;;  %2380 = vmatpush3.bf16.msra.mxu0 %v2509_v12 }
  0x5a   : > { %2325 = vmatprep.mubr.msk.bf16.mxu1 %vm832_vm0, %v2215_v15  ;;  %2331 = vmatprep.subr.bf16.mxu1 %v2510_v18 }
  0x5b   : > { %2389 = vmatprep.subr.bf16.mxu0 %v2511_v19 }
  0x5c   : > { %2374 = vmatmul.mubr.msk.bf16.gmra.mrb[4].mxu0 %vm832_vm0, %v2229_v20 }
  0x5d   : > { %2332 = vmatpush3.bf16.msra.mxu1 %v2510_v18  ;;  %2381 = vmatprep.mubr.msk.bf16.mxu0 %vm832_vm0, %v2712_v10  ;;  %v2219_v10 = vpack.c.bf16 %v727_v1, %v2808_v53 }
  0x5e   : > { %2401 = vmatprep.subr.bf16.mxu1 %v2642_v0 }
  0x60   : > { %2326 = vmatmul.mubr.msk.bf16.gmra.mrb[4].mxu1 %vm832_vm0, %v2216_v21 }
  0x61   : > { %2333 = vmatprep.mubr.msk.bf16.mxu1 %vm832_vm0, %v2217_v22 }
  0x64   : > { %2382 = vmatmul.mubr.msk.bf16.vlgmr.msra.gmra.mrb[0].mxu0 %vm832_vm0, %v2739_v24  ;;  %v2220_v24 = vpack.c.bf16 %v729_v14, %v728_v3 }
  0x65   : > { %2390 = vmatpush3.bf16.msra.mxu0 %v2511_v19  ;;  %2385 = vmatprep.mubr.msk.bf16.mxu0 %vm832_vm0, %v2776_v37 }
  0x66   : > { %2391 = vmatprep.subr.bf16.mxu0 %v2512_v27 }
  0x68   : > { %2334 = vmatmul.mubr.msk.bf16.vlgmr.msra.gmra.mrb[0].mxu1 %vm832_vm0, %v2218_v29 }
  0x69   : > { %2403 = vmatpush3.bf16.msra.mxu1 %v2642_v0  ;;  %2392 = vmatpush3.bf16.msra.mxu0 %v2512_v27  ;;  %v2230_v0 = vpack.c.bf16 %v2835_v5, %v2816_v56 }
  0x6a   : > { %2337 = vmatprep.mubr.msk.bf16.mxu1 %vm832_vm0, %v2219_v10  ;;  %2402 = vmatprep.subr.bf16.mxu1 %v2651_v2 }
  0x6c   : > { %2386 = vmatmul.mubr.msk.bf16.gmra.mrb[4].mxu0 %vm832_vm0, %v2176_v30 }
  0x6d   : > { %2393 = vmatprep.mubr.msk.bf16.mxu0 %vm832_vm0, %v2214_v13  ;;  %2404 = vmatpush3.bf16.msra.mxu1 %v2651_v2 }
  0x70   : > { %2338 = vmatmul.mubr.msk.bf16.gmra.mrb[4].mxu1 %vm832_vm0, %v2220_v24 }
  0x71   : > { %2349 = vmatprep.mubr.msk.bf16.mxu1 %vm832_vm0, %v2223_v8 }
  0x74   : > { %2394 = vmatmul.mubr.msk.bf16.vlgmr.msra.gmra.mrb[0].mxu0 %vm832_vm0, %v2215_v15 }
  0x75   : > { %2397 = vmatprep.mubr.msk.bf16.mxu0 %vm832_vm0, %v2216_v21 }
  0x7c   : > { %2398 = vmatmul.mubr.msk.bf16.gmra.mrb[4].mxu0 %vm832_vm0, %v2230_v0  ;;  %2350 = vmatmul.mubr.msk.bf16.vlgmr.msra.gmra.mrb[4].mxu1 %vm832_vm0, %v2224_v31 }
 0x13b   : > { %v2335_v2 = vpop.f32.mrb[0].mxu1 }
 0x13c   : > { %v1208_v16 = vpop.f32.mrb[1].mxu1 }
 0x13d   : > { %v2336_v25 = vpop.f32.mrb[2].mxu1 }
 0x13e   : > { %v1211_v32 = vpop.f32.mrb[3].mxu1 }
 0x147   : > { %v2395_v4 = vpop.f32.mrb[0].mxu0 }
 0x148   : > { %v2405_v33 = vadd.f32 %v2395_v4, %v2335_v2  ;;  %v1707_v34 = vpop.f32.mrb[1].mxu0 }
 0x149   : > { %v2406_v35 = vadd.f32 %v1707_v34, %v1208_v16  ;;  %v2396_v26 = vpop.f32.mrb[2].mxu0 }
 0x14a   : > { %v1755_v36 = vadd.f32 %v2405_v33, %v2908_v17  ;;  %v2407_v37 = vadd.f32 %v2396_v26, %v2336_v25  ;;  %v1710_v38 = vpop.f32.mrb[3].mxu0 }
 0x14b   : > { %v1753_v39 = vadd.f32 %v2406_v35, %v2908_v17  ;;  %v2408_v40 = vadd.f32 %v1710_v38, %v1211_v32 }
 0x14c   : > { %v2233_v41 = vpack.c.bf16 %v1755_v36, %v1755_v36  ;;  %v1756_v23 = vadd.f32 %v2407_v37, %v2908_v17 }
 0x14d   : > { %v2231_v42 = vpack.c.bf16 %v1753_v39, %v1753_v39  ;;  %v1754_v43 = vadd.f32 %v2408_v40, %v2908_v17 }
 0x14e   : > { %1796 = vst.msk [vmem:[%s2915_s0 + $0x8] sm:$0xf] %vm1793_vm3, %v2233_v41  ;;  %v1762_v44 = vpack.c.bf16 %v1756_v23, %v1755_v36  ;;  %v2234_v45 = vpack.c.bf16 %v1756_v23, %v1756_v23 }
 0x14f   : > { %1794 = vst.msk [vmem:[%s2915_s0] sm:$0xf] %vm1793_vm3, %v2231_v42  ;;  %v1761_v46 = vpack.c.bf16 %v1754_v43, %v1753_v39  ;;  %v2232_v47 = vpack.c.bf16 %v1754_v43, %v1754_v43  ;;  %v2399_v48 = vpop.f32.mrb[4].mxu0  ;;  %v2351_v49 = vpop.f32.mrb[4].mxu1 }
 0x150   : > { %1797 = vst.msk [vmem:[%s2915_s0 + $0xc] sm:$0xf] %vm1793_vm3, %v2234_v45  ;;  %v1804_v50 = vunpack.c.l.bf16 %v1762_v44  ;;  %v1805_v51 = vunpack.c.h.bf16 %v1762_v44  ;;  %v1723_v52 = vpop.f32.mrb[5].mxu0  ;;  %v2409_v53 = vadd.f32 %v2399_v48, %v2351_v49  ;;  %v1331_v54 = vpop.f32.mrb[5].mxu1 }
 0x151   : > { %1795 = vst.msk [vmem:[%s2915_s0 + $0x4] sm:$0xf] %vm1793_vm3, %v2232_v47  ;;  %v1802_v55 = vunpack.c.l.bf16 %v1761_v46  ;;  %v1803_v56 = vunpack.c.h.bf16 %v1761_v46  ;;  %v2400_v57 = vpop.f32.mrb[6].mxu0  ;;  %v2410_v58 = vadd.f32 %v1723_v52, %v1331_v54  ;;  %v2352_v59 = vpop.f32.mrb[6].mxu1 }
 0x152   : > { %v1836_v60 = vmul.f32 %v1804_v50, %v1804_v50  ;;  %v1726_v61 = vpop.f32.mrb[7].mxu0  ;;  %v1334_v62 = vpop.f32.mrb[7].mxu1  ;;  %v1814_v6 = vsel %vm1810_vm4, %v1804_v50, 0.0  ;;  %v1837_v7 = vmul.f32 %v1805_v51, %v1805_v51  ;;  %v1759_v11 = vadd.f32 %v2409_v53, %v2908_v17 }
 0x153   : > { %v1811_v63 = vsel %vm1810_vm4, %v1802_v55, 0.0  ;;  %v1812_v1 = vsel %vm1810_vm4, %v1803_v56, 0.0  ;;  %v1834_v3 = vmul.f32 %v1802_v55, %v1802_v55  ;;  %v1835_v5 = vmul.f32 %v1803_v56, %v1803_v56 }
 0x154   : > { %v1813_v9 = vadd.f32 %v1812_v1, %v1811_v63  ;;  %v1757_v14 = vadd.f32 %v2410_v58, %v2908_v17  ;;  %v2411_v15 = vadd.f32 %v2400_v57, %v2352_v59  ;;  %v2237_v20 = vpack.c.bf16 %v1759_v11, %v1759_v11 }
 0x155   : > { %v1842_v12 = vsel %vm1810_vm4, %v1834_v3, 0.0  ;;  %v1843_v13 = vsel %vm1810_vm4, %v1835_v5, 0.0  ;;  %v2412_v21 = vadd.f32 %v1726_v61, %v1334_v62  ;;  %v1816_v22 = vsel %vm1810_vm4, %v1805_v51, 0.0 }
 0x156   : > { %v1815_v18 = vadd.f32 %v1814_v6, %v1813_v9  ;;  %v1844_v19 = vadd.f32 %v1843_v13, %v1842_v12  ;;  %v1845_v27 = vsel %vm1810_vm4, %v1836_v60, 0.0  ;;  %v2235_v28 = vpack.c.bf16 %v1757_v14, %v1757_v14  ;;  %1800 = vst.msk [vmem:[%s2915_s0 + $0x18] sm:$0xf] %vm1793_vm3, %v2237_v20 }
 0x157   : > { %v1760_v29 = vadd.f32 %v2411_v15, %v2908_v17  ;;  %v1758_v30 = vadd.f32 %v2412_v21, %v2908_v17  ;;  %v1847_v8 = vsel %vm1810_vm4, %v1837_v7, 0.0 }
 0x158   : > { %v1846_v10 = vadd.f32 %v1845_v27, %v1844_v19  ;;  %v1817_v24 = vadd.f32 %v1816_v22, %v1815_v18  ;;  %1798 = vst.msk [vmem:[%s2915_s0 + $0x10] sm:$0xf] %vm1793_vm3, %v2235_v28 }
 0x159   : > { %v1764_v0 = vpack.c.bf16 %v1760_v29, %v1759_v11  ;;  %v2238_v31 = vpack.c.bf16 %v1760_v29, %v1760_v29  ;;  %v1763_v2 = vpack.c.bf16 %v1758_v30, %v1757_v14  ;;  %v2236_v16 = vpack.c.bf16 %v1758_v30, %v1758_v30 }
 0x15a   : > { %v1848_v25 = vadd.f32 %v1847_v8, %v1846_v10 }
 0x15b   : > { %1801 = vst.msk [vmem:[%s2915_s0 + $0x1c] sm:$0xf] %vm1793_vm3, %v2238_v31  ;;  %v1808_v32 = vunpack.c.l.bf16 %v1764_v0  ;;  %1799 = vst.msk [vmem:[%s2915_s0 + $0x14] sm:$0xf] %vm1793_vm3, %v2236_v16  ;;  %v1806_v4 = vunpack.c.l.bf16 %v1763_v2  ;;  %v1807_v33 = vunpack.c.h.bf16 %v1763_v2  ;;  %v1809_v34 = vunpack.c.h.bf16 %v1764_v0 }
 0x15d   : > { %v1818_v17 = vsel %vm1810_vm4, %v1806_v4, 0.0  ;;  %v1838_v35 = vmul.f32 %v1806_v4, %v1806_v4  ;;  %v1839_v26 = vmul.f32 %v1807_v33, %v1807_v33  ;;  %v1840_v37 = vmul.f32 %v1808_v32, %v1808_v32 }
 0x15e   : > { %v1819_v36 = vadd.f32 %v1818_v17, %v1817_v24  ;;  %v1820_v38 = vsel %vm1810_vm4, %v1807_v33, 0.0  ;;  %v1822_v23 = vsel %vm1810_vm4, %v1808_v32, 0.0  ;;  %v1841_v42 = vmul.f32 %v1809_v34, %v1809_v34 }
 0x15f   : > { %v1849_v39 = vsel %vm1810_vm4, %v1838_v35, 0.0  ;;  %v1851_v43 = vsel %vm1810_vm4, %v1839_v26, 0.0  ;;  %v1824_v46 = vsel %vm1810_vm4, %v1809_v34, 0.0  ;;  %v1853_v47 = vsel %vm1810_vm4, %v1840_v37, 0.0 }
 0x160   : > { %v1821_v40 = vadd.f32 %v1820_v38, %v1819_v36  ;;  %v1850_v41 = vadd.f32 %v1849_v39, %v1848_v25  ;;  %v1855_v50 = vsel %vm1810_vm4, %v1841_v42, 0.0 }
 0x162   : > { %v1823_v44 = vadd.f32 %v1822_v23, %v1821_v40  ;;  %v1852_v45 = vadd.f32 %v1851_v43, %v1850_v41 }
 0x164   : > { %v1825_v48 = vadd.f32 %v1824_v46, %v1823_v44  ;;  %v1854_v49 = vadd.f32 %v1853_v47, %v1852_v45 }
 0x166   : > { %v1826_v51 = vrot.slane %v1825_v48, 4  ;;  %v1856_v52 = vadd.f32 %v1855_v50, %v1854_v49 }
 0x168   : > { %v1827_v53 = vadd.f32 %v1826_v51, %v1825_v48  ;;  %v1857_v54 = vrot.slane %v1856_v52, 4 }
 0x16a   : > { %v1828_v55 = vrot.slane %v1827_v53, 2  ;;  %v1858_v56 = vadd.f32 %v1857_v54, %v1856_v52 }
 0x16c   : > { %v1829_v57 = vadd.f32 %v1828_v55, %v1827_v53  ;;  %v1859_v58 = vrot.slane %v1858_v56, 2 }
 0x16e   : > { %v1830_v59 = vrot.slane %v1829_v57, 1  ;;  %v1860_v60 = vadd.f32 %v1859_v58, %v1858_v56 }
 0x170   : > { %v1831_v61 = vadd.f32 %v1830_v59, %v1829_v57  ;;  %v1861_v62 = vrot.slane %v1860_v60, 1 }
 0x172   : > { %1833 = vst.msk [vmem:[%s558_s27] sm:$0x1] %vm1832_vm5, %v1831_v61  ;;  %v1862_v63 = vadd.f32 %v1861_v62, %v1860_v60 }
 0x174   : > { %1863 = vst.msk [vmem:[%s564_s12] sm:$0x1] %vm1832_vm5, %v1862_v63 }
 0x175 PF: > { %s20_s30 = sadd.s32 1, %s2567_s30   ;;  %s2983_s28 = smov %s2563_s29 }
 0x176   : > { %p17_p5 = scmp.ge.s32.totalorder %s20_s30, 4   ;;  %s2984_s29 = smov %s2986_s10 }
 0x178   :  { %19 = sbr.rel (!%p17_p5) target bundleno = 2 (0x2), region = 117 }

// kernel: resnet_block_forward.5
= control target key start
LH: loop header
LB: loop body
LE: loop exit
PB: predicated region body
PF: predicated region fallthrough
CT: control target
= control target key end

     0   :  { %14 = vsyncpa [#allocation3], 0  ;;  %s3453_s0 = inlined_call_operand.vmem [shape: bf16[2,8,8,64], index: 0, kind: input, shape index: {}, may-alias: {0,1,2}]   ;;  %s3454_s1 = inlined_call_operand.vmem [shape: bf16[2,8,8,64], index: 1, kind: input, shape index: {}, may-alias: {0,1,2}]   ;;  %s3455_s2 = inlined_call_operand.vmem [shape: bf16[2,8,8,64], index: 2, kind: input, shape index: {}, may-alias: {0,1,2}]   ;;  %s3456_s3 = inlined_call_operand.vmem [shape: f32[2,1,64], index: 3, kind: input, shape index: {}]   ;;  %s3457_s4 = inlined_call_operand.vmem [shape: f32[2,1,64], index: 4, kind: input, shape index: {}]   ;;  %s3458_s5 = inlined_call_operand.vmem [shape: bf16[576,64], index: 5, kind: input, shape index: {}]   ;;  %s3459_s6 = inlined_call_operand.vmem [shape: f32[1,64], index: 6, kind: input, shape index: {}]   ;;  %s3460_s7 = inlined_call_operand.vmem [shape: f32[2,8,8,32], index: 7, kind: input, shape index: {}]   ;;  %s3461_s8 = inlined_call_operand.vmem [shape: bf16[32,64], index: 8, kind: input, shape index: {}]   ;;  %s3462_s9 = inlined_call_operand.hbm [shape: f32[2,8,8,64], index: 9, kind: output, shape index: {}]  }
   0x1   :  { %16 = vsyncpa [#allocation3 + $0x1], 0  ;;  %s2940_s28 = smov 0   ;;  %s2942_s29 = smov 0  }
   0x2   :  { %s2944_s30 = smov 0   ;;  %s2946_s10 = smov 0  }
   0x3   :  { %s2948_s11 = smov 0   ;;  %s2950_s12 = smov 0  }
   0x4 LB: > { %s2183_s13 = sadd.s32 4294967295, %s2883_s12   ;;  %s2184_s14 = sadd.s32 4294967294, %s2883_s12   ;;  %s2883_s12 = sphi %s2950_s12, %s22_s12   ;;  %s2879_s11 = sphi %s2948_s11, %s3469_s11   ;;  %s2875_s10 = sphi %s2946_s10, %s3468_s10   ;;  %s2871_s30 = sphi %s2944_s30, %s3467_s30   ;;  %s2867_s29 = sphi %s2942_s29, %s3466_s29   ;;  %s2863_s28 = sphi %s2940_s28, %s3465_s28  }
   0x5   : > { %s34_s15 = sadd.s32 1, %s2879_s11  ;;  %s286_s16 = sadd.s32 1, %s2871_s30 }
   0x6   : > { %p36_p0 = scmp.ge.s32.totalorder %s34_s15, 2  ;;  %p296_p1 = scmp.ne.s32.totalorder %s2871_s30, %s2867_s29 }
   0x7   : > { %p297_p2 = scmp.eq.s32.totalorder %s2183_s13, 1  ;;  %p302_p3 = scmp.ne.s32.totalorder %s2867_s29, %s2863_s28 }
   0x8   : > { %s3471_s15 = smov (%p36_p0, %s34_s15), 0  ;;  %p303_p5 = scmp.eq.s32.totalorder %s2184_s14, 1 }
   0x9   : > { %p2980_p4 = por %p297_p2, %p296_p1  ;;  %s281_s18 = ssub.s32 %s2879_s11, %s3471_s15 }
   0xa   : > { %p2187_p6 = scmp.ge.s32.totalorder %s2883_s12, 1  ;;  %p284_p7 = scmp.eq.s32.totalorder %s281_s18, 0 }
   0xb   : > { %p2987_p8 = por %p303_p5, %p302_p3  ;;  %p406_p9 = scmp.lt.s32.totalorder %s2883_s12, 3 }
   0xc   : > { %s2993_s20 = scalar_select %p284_p7, %s2871_s30, %s286_s16  }
   0xd   : > { %p407_p10 = pnand %p2187_p6, %p406_p9 }
   0xe   : > { %v2735_v0 = vld [vmem:[%s3458_s5 + $0x20] sm:$0xff] (!%p407_p10)   ;;  %p502_p11 = scmp.lt.s32.totalorder (!%p407_p10), %s2875_s10, 1  ;;  %v2737_v2 = vld [vmem:[%s3458_s5 + $0x28] sm:$0xff] (!%p407_p10)   ;;  %v2739_v4 = vld [vmem:[%s3458_s5 + $0x30] sm:$0xff] (!%p407_p10)   ;;  %vm740_vm0 = vcmask (!%p407_p10), 1046528   ;;  %vm841_vm1 = vcmask (!%p407_p10), 523264  }
   0xf   : > { %410 = sbr.rel (%p407_p10) target bundleno = 376 (0x178), region = 56  ;;  %v2736_v1 = vld [vmem:[%s3458_s5 + $0xa0] sm:$0xff] (!%p407_p10)   ;;  %2448 = vmatprep.subr.bf16.mxu1 (!%p407_p10), %v2735_v0  ;;  %v2738_v3 = vld [vmem:[%s3458_s5 + $0xa8] sm:$0xff] (!%p407_p10)   ;;  %v2740_v5 = vld [vmem:[%s3458_s5 + $0xb0] sm:$0xff] (!%p407_p10)   ;;  %vm709_vm2 = vcmask (!%p407_p10), 1040384   ;;  %vm1907_vm3 = vcmask (!%p407_p10), 261120  }
  0x10   : > { %2528 = vmatprep.subr.bf16.mxu0 (!%p407_p10), %v2736_v1  ;;  %2449 = vmatpush3.bf16.msra.mxu1 (!%p407_p10), %v2735_v0  ;;  %v2741_v6 = vld [vmem:[%s3458_s5 + $0x38] sm:$0xff] (!%p407_p10)   ;;  %v3043_v23 = vld [vmem:[%s3458_s5] sm:$0xff] (!%p407_p10)   ;;  %s2350_s18 = sshll.u32 (!%p407_p10), %s2875_s10, 10 }
  0x11   : > { %2529 = vmatpush3.bf16.msra.mxu0 (!%p407_p10), %v2736_v1  ;;  %2450 = vmatprep.subr.bf16.mxu1 (!%p407_p10), %v2737_v2  ;;  %v2742_v7 = vld [vmem:[%s3458_s5 + $0xb8] sm:$0xff] (!%p407_p10)   ;;  %v3050_v27 = vld [vmem:[%s3458_s5 + $0xc0] sm:$0xff] (!%p407_p10)   ;;  %s3398_s23 = scalar_lea.hbm (!%p407_p10), %s3462_s9, %s2350_s18 }
  0x12   : > { %2530 = vmatprep.subr.bf16.mxu0 (!%p407_p10), %v2738_v3 }
  0x14   : > { %2451 = vmatpush3.bf16.msra.mxu1 (!%p407_p10), %v2737_v2 }
  0x15   : > { %2531 = vmatpush3.bf16.msra.mxu0 (!%p407_p10), %v2738_v3  ;;  %2452 = vmatprep.subr.bf16.mxu1 (!%p407_p10), %v2739_v4 }
  0x16   : > { %s3006_s26 = scalar_select %p502_p11, %s2875_s10, 1  ;;  %2532 = vmatprep.subr.bf16.mxu0 %v2740_v5 }
  0x18   : > { %s2321_s16 = sshll.u32 %s3006_s26, 5  ;;  %s529_s27 = scalar_lea.vmem %s3456_s3, %s3006_s26  ;;  %2453 = vmatpush3.bf16.msra.mxu1 %v2739_v4 }
  0x19   : > { %s3021_s24 = scalar_lea.vmem %s3454_s1, %s2321_s16  ;;  %s532_s21 = scalar_lea.vmem %s3457_s4, %s3006_s26  ;;  %v2197_v8 = vld [vmem:[%s529_s27] ss:$0 sm:$0xff]  ;;  %2533 = vmatpush3.bf16.msra.mxu0 %v2740_v5  ;;  %2454 = vmatprep.subr.bf16.mxu1 %v2741_v6 }
  0x1a   : > { %v2352_v9 = vld [vmem:[%s3021_s24] sm:$0xff]   ;;  %v2369_v12 = vld [vmem:[%s3021_s24 + $0x18] sm:$0xff]   ;;  %v2367_v13 = vld [vmem:[%s3021_s24 + $0x8] sm:$0xff]   ;;  %2534 = vmatprep.subr.bf16.mxu0 %v2742_v7  ;;  %s2324_s13 = sshll.u32 %s3006_s26, 6  ;;  %s482_s27 = sand.u32 1, %s2867_s29  }
  0x1b   : > { %v2353_v10 = vunpack.c.l.bf16 %v2352_v9  ;;  %v2354_v11 = vunpack.c.h.bf16 %v2352_v9  ;;  %v2198_v14 = vld [vmem:[%s532_s21] ss:$0 sm:$0xff]  ;;  %v2366_v15 = vunpack.c.h.bf16 %v2369_v12  ;;  %v2357_v16 = vunpack.c.l.bf16 %v2367_v13  ;;  %v2368_v28 = vld [vmem:[%s3021_s24 + $0x10] sm:$0xff]   ;;  %s3344_s0 = scalar_lea.vmem %s3460_s7, %s2324_s13  ;;  %s2188_s24 = sshll.u32 %s482_s27, 6 }
  0x1c   : > { %v2358_v17 = vunpack.c.h.bf16 %v2367_v13  ;;  %v2365_v18 = vunpack.c.l.bf16 %v2369_v12  ;;  %v2361_v33 = vunpack.c.l.bf16 %v2368_v28  ;;  %2455 = vmatpush3.bf16.msra.mxu1 %v2741_v6  ;;  %v2362_v36 = vunpack.c.h.bf16 %v2368_v28  ;;  %s484_s14 = scalar_lea.vmem [#allocation2], %s2188_s24  ;;  %s3407_s10 = scalar_lea.sflag [#allocation3], %s482_s27 }
  0x1d   : > { %v591_v19 = vmul.f32 %v2353_v10, %v2197_v8  ;;  %v592_v20 = vmul.f32 %v2354_v11, %v2197_v8  ;;  %v598_v21 = vmul.f32 %v2366_v15, %v2197_v8  ;;  %v593_v22 = vmul.f32 %v2357_v16, %v2197_v8  ;;  %2535 = vmatpush3.bf16.msra.mxu0 %v2742_v7  ;;  %s2032_s21 = sshll.u32 %s484_s14, 4  ;;  %s2887_s26 = smov [#allocation2]   ;;  %s3400_s21 = int_to_ptr.vmem [resolvable:$true] %s2032_s21 }
  0x1e   : > { %v594_v24 = vmul.f32 %v2358_v17, %v2197_v8  ;;  %v597_v29 = vmul.f32 %v2365_v18, %v2197_v8  ;;  %2464 = vmatprep.subr.bf16.mxu1 %v3043_v23  ;;  %v595_v39 = vmul.f32 %v2361_v33, %v2197_v8  ;;  %2544 = vmatprep.subr.bf16.mxu0 %v3050_v27  ;;  %v2885_v12 = vmov 0.0|0.0   ;;  %s2809_s25 = sshll.u32 %s2887_s26, 4  ;;  %s2810_s25 = int_to_ptr.vmem [resolvable:$false] %s2809_s25 }
  0x1f   : > { %v599_v25 = vadd.f32 %v2198_v14, %v591_v19  ;;  %v3045_v26 = vadd.f32 %v2198_v14, %v592_v20  ;;  %v3053_v30 = vadd.f32 %v2198_v14, %v598_v21  ;;  %v3055_v31 = vadd.f32 %v2198_v14, %v593_v22  ;;  %v2745_v22 = vld [vmem:[%s3458_s5 + $0x8] sm:$0xff]   ;;  %s2811_s24 = scalar_lea.vmem %s2810_s25, 2048  ;;  %p2812_p1 = scmp.lt.s32.totalorder %s3400_s21, %s2810_s25 }
  0x20   : > { %v3057_v32 = vadd.f32 %v2198_v14, %v594_v24  ;;  %v3063_v40 = vadd.f32 %v2198_v14, %v597_v29  ;;  %v596_v42 = vmul.f32 %v2362_v36, %v2197_v8  ;;  %v3067_v43 = vadd.f32 %v2198_v14, %v595_v39 }
  0x21   : > { %v2200_v34 = vmul.f32 -1.442695, %v599_v25  ;;  %v2201_v35 = vmul.f32 -1.442695, %v3045_v26  ;;  %v2207_v37 = vmul.f32 -1.442695, %v3053_v30 }
  0x22   : > { %v2202_v38 = vmul.f32 -1.442695, %v3055_v31  ;;  %v2203_v41 = vmul.f32 -1.442695, %v3057_v32  ;;  %v3069_v44 = vadd.f32 %v2198_v14, %v596_v42  ;;  %v2204_v45 = vmul.f32 -1.442695, %v3067_v43 }
  0x23   : > { %2773 = vpow2.f32 %v2200_v34  ;;  %v2206_v46 = vmul.f32 -1.442695, %v3063_v40  ;;  %v2886_v19 = vmov 0.0  }
  0x24   : > { %2775 = vpow2.f32 %v2207_v37  ;;  %v2205_v47 = vmul.f32 -1.442695, %v3069_v44  ;;  %v689_v20 = vrot.slane %v2886_v19, 7  ;;  %v2746_v37 = vld [vmem:[%s3458_s5 + $0xc8] sm:$0xff]  }
  0x25   : > { %2777 = vpow2.f32 %v2201_v35 }
  0x26   : > { %2779 = vpow2.f32 %v2202_v38 }
  0x27   : > { %2781 = vpow2.f32 %v2203_v41 }
  0x28   : > { %2783 = vpow2.f32 %v2204_v45 }
  0x29   : > { %2785 = vpow2.f32 %v2205_v47 }
  0x2a   : > { %2787 = vpow2.f32 %v2206_v46 }
  0x2d   : > { %v2774_v48 = vpop.eup %2773 }
  0x2e   : > { %v2776_v49 = vpop.eup %2775  ;;  %v631_v50 = vadd.f32 1.0, %v2774_v48 }
  0x2f   : > { %v2778_v51 = vpop.eup %2777  ;;  %v638_v52 = vadd.f32 1.0, %v2776_v49 }
  0x30   : > { %v2780_v53 = vpop.eup %2779  ;;  %2789 = vrcp.f32 %v631_v50  ;;  %v632_v54 = vadd.f32 1.0, %v2778_v51 }
  0x31   : > { %v2782_v55 = vpop.eup %2781  ;;  %2791 = vrcp.f32 %v638_v52  ;;  %v633_v56 = vadd.f32 1.0, %v2780_v53  ;;  %v2748_v52 = vld [vmem:[%s3458_s5 + $0xd0] sm:$0xff]   ;;  %v2749_v53 = vld [vmem:[%s3458_s5 + $0x18] sm:$0xff]  }
  0x32   : > { %v2784_v57 = vpop.eup %2783  ;;  %2793 = vrcp.f32 %v632_v54  ;;  %v634_v58 = vadd.f32 1.0, %v2782_v55 }
  0x33   : > { %v2786_v59 = vpop.eup %2785  ;;  %2795 = vrcp.f32 %v633_v56  ;;  %v635_v60 = vadd.f32 1.0, %v2784_v57 }
  0x34   : > { %v2788_v61 = vpop.eup %2787  ;;  %2797 = vrcp.f32 %v634_v58  ;;  %v636_v62 = vadd.f32 1.0, %v2786_v59  ;;  %v2750_v59 = vld [vmem:[%s3458_s5 + $0xd8] sm:$0xff]  }
  0x35   : > { %2799 = vrcp.f32 %v635_v60  ;;  %v637_v63 = vadd.f32 1.0, %v2788_v61  ;;  %v2751_v60 = vld [vmem:[%s3458_s5 + $0x40] sm:$0xff]  }
  0x36   : > { %2801 = vrcp.f32 %v636_v62 }
  0x37   : > { %2803 = vrcp.f32 %v637_v63 }
  0x3a   : > { %v2790_v0 = vpop.eup %2789 }
  0x3b   : > { %v2792_v1 = vpop.eup %2791  ;;  %v3074_v2 = vmul.f32 %v2790_v0, %v599_v25 }
  0x3c   : > { %v2794_v3 = vpop.eup %2793  ;;  %v3083_v9 = vmul.f32 %v2792_v1, %v3053_v30 }
  0x3d   : > { %v2796_v4 = vpop.eup %2795  ;;  %v762_v5 = vpack.c.bf16 %v3074_v2, %v3074_v2  ;;  %v3079_v6 = vmul.f32 %v2794_v3, %v3045_v26  ;;  %v721_v7 = vrot.slane %v3074_v2, 1  ;;  %v690_v28 = vrot.slane %v3074_v2, 7 }
  0x3e   : > { %v2798_v8 = vpop.eup %2797  ;;  %v3086_v10 = vmul.f32 %v2796_v4, %v3055_v31  ;;  %v728_v33 = vrot.slane %v3083_v9, 1 }
  0x3f   : > { %v2800_v11 = vpop.eup %2799  ;;  %v2209_v13 = vcombine.low %v2885_v12, %v762_v5  ;;  %v3090_v14 = vmul.f32 %v2798_v8, %v3057_v32  ;;  %v722_v15 = vrot.slane %v3079_v6, 1  ;;  %v3094_v16 = vsel %vm740_vm0, %v721_v7, 0.0  ;;  %v2752_v5 = vld [vmem:[%s3458_s5 + $0xe0] sm:$0xff]   ;;  %v2753_v7 = vld [vmem:[%s3458_s5 + $0x48] sm:$0xff]  }
  0x40   : > { %v2802_v17 = vpop.eup %2801  ;;  %v3098_v18 = vpack.c.bf16 %v3086_v10, %v3079_v6  ;;  %v723_v21 = vrot.slane %v3086_v10, 1  ;;  %v3119_v31 = vmul.f32 %v2800_v11, %v3067_v43  ;;  %v3153_v43 = vsel %vm709_vm2, 0.0, %v689_v20  ;;  %v2755_v20 = vld [vmem:[%s3458_s5 + $0x50] sm:$0xff]  }
  0x41   : > { %v2804_v24 = vpop.eup %2803  ;;  %2456 = vmatprep.mubr.msk.bf16.mxu1 %vm841_vm1, %v2209_v13  ;;  %v724_v25 = vrot.slane %v3090_v14, 1  ;;  %v3108_v26 = vsel %vm740_vm0, %v722_v15, 0.0  ;;  %v3122_v32 = vmul.f32 %v2802_v17, %v3069_v44  ;;  %v3156_v44 = vsel %vm709_vm2, 0.0, %v690_v28  ;;  %v2757_v28 = vld [vmem:[%s3458_s5 + $0x58] sm:$0xff]  }
  0x42   : > { %2457 = vmatmul.mubr.msk.bf16.vlgmr.msra.gmra.mrb[0].mxu1 %vm841_vm1, %v3098_v18  ;;  %v3114_v29 = vsel %vm740_vm0, %v723_v21, 0.0  ;;  %v2344_v30 = vpack.c.bf16 %v3108_v26, %v3094_v16  ;;  %v3130_v35 = vmul.f32 %v2804_v24, %v3063_v40  ;;  %v3140_v38 = vpack.c.bf16 %v3119_v31, %v3090_v14 }
  0x43   : > { %v3126_v34 = vsel %vm740_vm0, %v724_v25, 0.0  ;;  %2465 = vmatpush3.bf16.msra.mxu1 %v3043_v23  ;;  %v2747_v23 = vld [vmem:[%s3458_s5 + $0x10] sm:$0xff]   ;;  %v725_v39 = vrot.slane %v3119_v31, 1  ;;  %v726_v40 = vrot.slane %v3122_v32, 1  ;;  %v691_v47 = vrot.slane %v3079_v6, 7 }
  0x44   : > { %v2345_v36 = vpack.c.bf16 %v3126_v34, %v3114_v29  ;;  %2536 = vmatprep.mubr.msk.bf16.mxu0 %vm841_vm1, %v2344_v30  ;;  %2466 = vmatprep.subr.bf16.mxu1 %v2745_v22  ;;  %v3149_v41 = vpack.c.bf16 %v3130_v35, %v3122_v32  ;;  %v727_v42 = vrot.slane %v3130_v35, 1  ;;  %v692_v48 = vrot.slane %v3086_v10, 7  ;;  %v2756_v25 = vld [vmem:[%s3458_s5 + $0xf0] sm:$0xff]  }
  0x45   : > { %2460 = vmatprep.mubr.msk.bf16.mxu1 %vm841_vm1, %v3140_v38  ;;  %v3162_v45 = vsel %vm740_vm0, %v725_v39, 0.0  ;;  %v3165_v46 = vsel %vm740_vm0, %v726_v40, 0.0  ;;  %v3170_v49 = vsel %vm740_vm0, %v728_v33, 0.0  ;;  %v3192_v55 = vsel %vm709_vm2, 0.0, %v691_v47  ;;  %v2761_v39 = vld [vmem:[%s3458_s5 + $0x68] sm:$0xff]   ;;  %v2763_v40 = vld [vmem:[%s3458_s5 + $0x70] sm:$0xff]  }
  0x46   : > { %2537 = vmatmul.mubr.msk.bf16.vlgmr.msra.gmra.mrb[0].mxu0 %vm841_vm1, %v2345_v36  ;;  %v2346_v50 = vpack.c.bf16 %v3165_v46, %v3162_v45  ;;  %v3176_v51 = vsel %vm740_vm0, %v727_v42, 0.0  ;;  %v3195_v56 = vsel %vm709_vm2, 0.0, %v692_v48  ;;  %v693_v57 = vrot.slane %v3090_v14, 7  ;;  %v2758_v36 = vld [vmem:[%s3458_s5 + $0xf8] sm:$0xff]   ;;  %v2764_v42 = vld [vmem:[%s3458_s5 + $0x110] sm:$0xff]   ;;  %v2769_v47 = vld [vmem:[%s3458_s5 + $0x88] sm:$0xff]  }
  0x47   : > { %2545 = vmatpush3.bf16.msra.mxu0 %v3050_v27  ;;  %2467 = vmatpush3.bf16.msra.mxu1 %v2745_v22  ;;  %v2328_v27 = vpack.c.bf16 %v3156_v44, %v3153_v43  ;;  %v2347_v54 = vpack.c.bf16 %v3170_v49, %v3176_v51  ;;  %v694_v58 = vrot.slane %v3119_v31, 7  ;;  %v2329_v61 = vpack.c.bf16 %v3195_v56, %v3192_v55 }
  0x48   : > { %2546 = vmatprep.subr.bf16.mxu0 %v2746_v37  ;;  %2468 = vmatprep.subr.bf16.mxu1 %v2747_v23  ;;  %v2341_v62 = vpack.c.bf16 %v3090_v14, %v3086_v10  ;;  %v695_v63 = vrot.slane %v3122_v32, 7  ;;  %v696_v0 = vrot.slane %v3130_v35, 7  ;;  %v2343_v1 = vpack.c.bf16 %v3083_v9, %v3130_v35 }
  0x49   : > { %2540 = vmatprep.mubr.msk.bf16.mxu0 %vm841_vm1, %v2346_v50  ;;  %v3216_v3 = vsel %vm709_vm2, 0.0, %v693_v57  ;;  %v3219_v4 = vsel %vm709_vm2, 0.0, %v694_v58  ;;  %v720_v8 = vrot.slane %v2886_v19, 1  ;;  %v697_v17 = vrot.slane %v3083_v9, 7  ;;  %v2754_v19 = vld [vmem:[%s3458_s5 + $0xe8] sm:$0xff]   ;;  %v2770_v50 = vld [vmem:[%s3458_s5 + $0x90] sm:$0xff]  }
  0x4a   : > { %2461 = vmatmul.mubr.msk.bf16.gmra.mrb[4].mxu1 %vm841_vm1, %v3149_v41  ;;  %v2330_v11 = vpack.c.bf16 %v3219_v4, %v3216_v3  ;;  %v3233_v13 = vsel %vm709_vm2, 0.0, %v695_v63  ;;  %v3236_v15 = vsel %vm709_vm2, 0.0, %v696_v0  ;;  %v1883_v58 = vld [vmem:[%s3344_s0 + $0x20] sm:$0xff]  ;;  %v1885_v63 = vld [vmem:[%s3344_s0 + $0x30] sm:$0xff]  ;;  %v1886_v0 = vld [vmem:[%s3344_s0 + $0x38] sm:$0xff] }
  0x4b   : > { %2547 = vmatpush3.bf16.msra.mxu0 %v2746_v37  ;;  %2469 = vmatpush3.bf16.msra.mxu1 %v2747_v23  ;;  %v2331_v21 = vpack.c.bf16 %v3236_v15, %v3233_v13  ;;  %v3249_v22 = vsel %vm740_vm0, %v720_v8, 0.0  ;;  %v3253_v24 = vsel %vm709_vm2, 0.0, %v697_v17  ;;  %v2759_v37 = vld [vmem:[%s3458_s5 + $0x60] sm:$0xff]   ;;  %v2338_v48 = vpack.c.bf16 %v3233_v13, %v3219_v4 }
  0x4c   : > { %2548 = vmatprep.subr.bf16.mxu0 %v2748_v52  ;;  %2470 = vmatprep.subr.bf16.mxu1 %v2749_v53  ;;  %v2332_v30 = vpack.c.bf16 %v3094_v16, %v3249_v22  ;;  %v2348_v33 = vpack.c.bf16 %v3153_v43, %v3253_v24  ;;  %v2333_v16 = vpack.c.bf16 %v3114_v29, %v3108_v26  ;;  %v2760_v23 = vld [vmem:[%s3458_s5 + $0x100] sm:$0xff]   ;;  %v2762_v29 = vld [vmem:[%s3458_s5 + $0x108] sm:$0xff]   ;;  %v2765_v43 = vld [vmem:[%s3458_s5 + $0x78] sm:$0xff]  }
  0x4d   : > { %2472 = vmatprep.mubr.msk.bf16.mxu1 %vm841_vm1, %v2328_v27  ;;  %v2334_v26 = vpack.c.bf16 %v3162_v45, %v3126_v34  ;;  %v2335_v34 = vpack.c.bf16 %v3176_v51, %v3165_v46  ;;  %v2766_v46 = vld [vmem:[%s3458_s5 + $0x118] sm:$0xff]   ;;  %v2771_v51 = vld [vmem:[%s3461_s8 + $0x8] sm:$0xff]   ;;  %v2340_v27 = vpack.c.bf16 %v3079_v6, %v3074_v2  ;;  %v1881_v2 = vld [vmem:[%s3344_s0 + $0x10] sm:$0xff] }
  0x4e   : > { %2541 = vmatmul.mubr.msk.bf16.gmra.mrb[4].mxu0 %vm841_vm1, %v2347_v54  ;;  %v1879_v54 = vld [vmem:[%s3344_s0] sm:$0xff]  ;;  %v1882_v6 = vld [vmem:[%s3344_s0 + $0x18] sm:$0xff] }
  0x4f   : > { %2549 = vmatpush3.bf16.msra.mxu0 %v2748_v52  ;;  %2471 = vmatpush3.bf16.msra.mxu1 %v2749_v53  ;;  %v2339_v52 = vpack.c.bf16 %v3253_v24, %v3236_v15  ;;  %v2772_v53 = vld [vmem:[%s3458_s5 + $0x98] sm:$0xff]   ;;  %v2314_v4 = vld [vmem:[%s3459_s6] ss:$0 sm:$0xff] }
  0x50   : > { %2550 = vmatprep.subr.bf16.mxu0 %v2750_v59  ;;  %2480 = vmatprep.subr.bf16.mxu1 %v2751_v60 }
  0x51   : > { %2552 = vmatprep.mubr.msk.bf16.mxu0 %vm841_vm1, %v2329_v61 }
  0x52   : > { %2473 = vmatmul.mubr.msk.bf16.vlgmr.msra.gmra.mrb[0].mxu1 %vm841_vm1, %v2329_v61 }
  0x53   : > { %2551 = vmatpush3.bf16.msra.mxu0 %v2750_v59  ;;  %2481 = vmatpush3.bf16.msra.mxu1 %v2751_v60  ;;  %v1884_v59 = vld [vmem:[%s3344_s0 + $0x28] sm:$0xff]  ;;  %v1888_v60 = vpack.c.bf16 %v1882_v6, %v1881_v2 }
  0x54   : > { %2560 = vmatprep.subr.bf16.mxu0 %v2752_v5  ;;  %2482 = vmatprep.subr.bf16.mxu1 %v2753_v7  ;;  %v1889_v61 = vpack.c.bf16 %v1884_v59, %v1883_v58 }
  0x55   : > { %2476 = vmatprep.mubr.msk.bf16.mxu1 %vm841_vm1, %v2330_v11 }
  0x56   : > { %2553 = vmatmul.mubr.msk.bf16.vlgmr.msra.gmra.mrb[0].mxu0 %vm841_vm1, %v2330_v11 }
  0x57   : > { %2561 = vmatpush3.bf16.msra.mxu0 %v2752_v5  ;;  %2483 = vmatpush3.bf16.msra.mxu1 %v2753_v7 }
  0x58   : > { %2562 = vmatprep.subr.bf16.mxu0 %v2754_v19  ;;  %2484 = vmatprep.subr.bf16.mxu1 %v2755_v20 }
  0x59   : > { %2556 = vmatprep.mubr.msk.bf16.mxu0 %vm841_vm1, %v2331_v21 }
  0x5a   : > { %2477 = vmatmul.mubr.msk.bf16.gmra.mrb[4].mxu1 %vm841_vm1, %v2331_v21 }
  0x5b   : > { %2563 = vmatpush3.bf16.msra.mxu0 %v2754_v19  ;;  %2485 = vmatpush3.bf16.msra.mxu1 %v2755_v20 }
  0x5c   : > { %2564 = vmatprep.subr.bf16.mxu0 %v2756_v25  ;;  %2486 = vmatprep.subr.bf16.mxu1 %v2757_v28 }
  0x5d   : > { %2488 = vmatprep.mubr.msk.bf16.mxu1 %vm841_vm1, %v2332_v30 }
  0x5e   : > { %2557 = vmatmul.mubr.msk.bf16.gmra.mrb[4].mxu0 %vm841_vm1, %v2348_v33 }
  0x5f   : > { %2565 = vmatpush3.bf16.msra.mxu0 %v2756_v25  ;;  %2487 = vmatpush3.bf16.msra.mxu1 %v2757_v28 }
  0x60   : > { %2566 = vmatprep.subr.bf16.mxu0 %v2758_v36  ;;  %2496 = vmatprep.subr.bf16.mxu1 %v2759_v37 }
  0x61   : > { %2568 = vmatprep.mubr.msk.bf16.mxu0 %vm841_vm1, %v3098_v18  ;;  %v769_v18 = vpack.c.bf16 %v3083_v9, %v3083_v9 }
  0x62   : > { %2489 = vmatmul.mubr.msk.bf16.vlgmr.msra.gmra.mrb[0].mxu1 %vm841_vm1, %v2333_v16 }
  0x63   : > { %2567 = vmatpush3.bf16.msra.mxu0 %v2758_v36  ;;  %2497 = vmatpush3.bf16.msra.mxu1 %v2759_v37  ;;  %v2290_v45 = vcombine.low %v769_v18, %v2885_v12  ;;  %v2337_v12 = vpack.c.bf16 %v3216_v3, %v3195_v56  ;;  %v2349_v56 = vpack.c.bf16 %v3249_v22, %v3170_v49 }
  0x64   : > { %2576 = vmatprep.subr.bf16.mxu0 %v2760_v23  ;;  %2498 = vmatprep.subr.bf16.mxu1 %v2761_v39  ;;  %v2342_v49 = vpack.c.bf16 %v3122_v32, %v3119_v31  ;;  %v1890_v31 = vpack.c.bf16 %v1886_v0, %v1885_v63 }
  0x65   : > { %2492 = vmatprep.mubr.msk.bf16.mxu1 %vm841_vm1, %v2334_v26 }
  0x66   : > { %2569 = vmatmul.mubr.msk.bf16.vlgmr.msra.gmra.mrb[0].mxu0 %vm841_vm1, %v3140_v38  ;;  %v2336_v38 = vpack.c.bf16 %v3192_v55, %v3156_v44  ;;  %v2768_v44 = vld [vmem:[%s3461_s8] sm:$0xff]   ;;  %v1880_v55 = vld [vmem:[%s3344_s0 + $0x8] sm:$0xff]  ;;  %s2805_s0 = scalar_lea.vmem %s3400_s21, 1024 }
  0x67   : > { %2577 = vmatpush3.bf16.msra.mxu0 %v2760_v23  ;;  %2499 = vmatpush3.bf16.msra.mxu1 %v2761_v39  ;;  %v1887_v57 = vpack.c.bf16 %v1880_v55, %v1879_v54  ;;  %p2806_p12 = scmp.ne.s32.totalorder %s3400_s21, %s2805_s0  ;;  %p2813_p2 = scmp.lt.s32.totalorder %s2811_s24, %s2805_s0 }
  0x68   : > { %2578 = vmatprep.subr.bf16.mxu0 %v2762_v29  ;;  %2500 = vmatprep.subr.bf16.mxu1 %v2763_v40 }
  0x69   : > { %2572 = vmatprep.mubr.msk.bf16.mxu0 %vm841_vm1, %v3149_v41  ;;  %v2767_v41 = vld [vmem:[%s3458_s5 + $0x80] sm:$0xff]   ;;  %p2807_p13 = pnand %p2806_p12, %p2980_p4  ;;  %p2814_p3 = por %p2813_p2, %p2812_p1 }
  0x6a   : > { %2493 = vmatmul.mubr.msk.bf16.gmra.mrb[4].mxu1 %vm841_vm1, %v2335_v34 }
  0x6b   : > { %2579 = vmatpush3.bf16.msra.mxu0 %v2762_v29  ;;  %2501 = vmatpush3.bf16.msra.mxu1 %v2763_v40  ;;  %p2808_p0 = pneg %p2807_p13 }
  0x6c   : > { %2580 = vmatprep.subr.bf16.mxu0 %v2764_v42  ;;  %2502 = vmatprep.subr.bf16.mxu1 %v2765_v43 }
  0x6d   : > { %2504 = vmatprep.mubr.msk.bf16.mxu1 %vm841_vm1, %v2336_v38  ;;  %p2815_p5 = pnand %p2814_p3, %p2808_p0 }
  0x6e   : > { %2573 = vmatmul.mubr.msk.bf16.gmra.mrb[4].mxu0 %vm841_vm1, %v2290_v45 }
  0x6f   : > { %2581 = vmatpush3.bf16.msra.mxu0 %v2764_v42  ;;  %2503 = vmatpush3.bf16.msra.mxu1 %v2765_v43 }
  0x70   : > { %2582 = vmatprep.subr.bf16.mxu0 %v2766_v46  ;;  %2512 = vmatprep.subr.bf16.mxu1 %v2767_v41 }
  0x71   : > { %2584 = vmatprep.mubr.msk.bf16.mxu0 %vm841_vm1, %v2333_v16 }
  0x72   : > { %2505 = vmatmul.mubr.msk.bf16.vlgmr.msra.gmra.mrb[0].mxu1 %vm841_vm1, %v2337_v12 }
  0x73   : > { %2583 = vmatpush3.bf16.msra.mxu0 %v2766_v46  ;;  %2513 = vmatpush3.bf16.msra.mxu1 %v2767_v41 }
  0x74   : > { %2592 = vmatprep.subr.bf16.mxu0 %v2768_v44  ;;  %2514 = vmatprep.subr.bf16.mxu1 %v2769_v47 }
  0x75   : > { %2508 = vmatprep.mubr.msk.bf16.mxu1 %vm841_vm1, %v2338_v48 }
  0x76   : > { %2585 = vmatmul.mubr.msk.bf16.vlgmr.msra.gmra.mrb[0].mxu0 %vm841_vm1, %v2334_v26 }
  0x77   : > { %2593 = vmatpush3.bf16.msra.mxu0 %v2768_v44  ;;  %2515 = vmatpush3.bf16.msra.mxu1 %v2769_v47 }
  0x78   : > { %2516 = vmatprep.subr.bf16.mxu1 %v2770_v50  ;;  %2588 = vmatprep.mubr.msk.bf16.mxu0 %vm841_vm1, %v2335_v34 }
  0x79   : > { %2594 = vmatprep.subr.bf16.mxu0 %v2771_v51 }
  0x7a   : > { %2509 = vmatmul.mubr.msk.bf16.gmra.mrb[4].mxu1 %vm841_vm1, %v2339_v52 }
  0x7b   : > { %2517 = vmatpush3.bf16.msra.mxu1 %v2770_v50  ;;  %2595 = vmatpush3.bf16.msra.mxu0 %v2771_v51 }
  0x7c   : > { %2518 = vmatprep.subr.bf16.mxu1 %v2772_v53  ;;  %2520 = vmatprep.mubr.msk.bf16.mxu1 %vm841_vm1, %v2340_v27 }
  0x7e   : > { %2589 = vmatmul.mubr.msk.bf16.gmra.mrb[4].mxu0 %vm841_vm1, %v2349_v56 }
  0x7f   : > { %2519 = vmatpush3.bf16.msra.mxu1 %v2772_v53  ;;  %2596 = vmatprep.mubr.msk.bf16.mxu0 %vm1907_vm3, %v1887_v57 }
  0x82   : > { %2521 = vmatmul.mubr.msk.bf16.vlgmr.msra.gmra.mrb[0].mxu1 %vm841_vm1, %v2341_v62 }
  0x83   : > { %2524 = vmatprep.mubr.msk.bf16.mxu1 %vm841_vm1, %v2342_v49 }
  0x86   : > { %2597 = vmatmul.mubr.msk.bf16.vlgmr.msra.gmra.mrb[0].mxu0 %vm1907_vm3, %v1888_v60 }
  0x87   : > { %2600 = vmatprep.mubr.msk.bf16.mxu0 %vm1907_vm3, %v1889_v61 }
  0x8a   : > { %2525 = vmatmul.mubr.msk.bf16.gmra.mrb[4].mxu1 %vm841_vm1, %v2343_v1 }
  0x8e   : > { %2601 = vmatmul.mubr.msk.bf16.gmra.mrb[4].mxu0 %vm1907_vm3, %v1890_v31 }
 0x155   : > { %v2522_v10 = vpop.f32.mrb[0].mxu1 }
 0x156   : > { %v1384_v14 = vpop.f32.mrb[1].mxu1 }
 0x157   : > { %v2523_v32 = vpop.f32.mrb[2].mxu1 }
 0x158   : > { %v1387_v62 = vpop.f32.mrb[3].mxu1 }
 0x159   : > { %v2598_v3 = vpop.f32.mrb[0].mxu0 }
 0x15a   : > { %v2604_v5 = vadd.f32 %v2598_v3, %v2522_v10  ;;  %v1954_v7 = vpop.f32.mrb[1].mxu0 }
 0x15b   : > { %v2605_v9 = vadd.f32 %v1954_v7, %v1384_v14  ;;  %v2599_v35 = vpop.f32.mrb[2].mxu0 }
 0x15c   : > { %v2002_v1 = vadd.f32 %v2604_v5, %v2314_v4  ;;  %v2606_v8 = vadd.f32 %v2599_v35, %v2523_v32  ;;  %v1957_v11 = vpop.f32.mrb[3].mxu0 }
 0x15d   : > { %v2000_v13 = vadd.f32 %v2605_v9, %v2314_v4  ;;  %v2607_v15 = vadd.f32 %v1957_v11, %v1387_v62  ;;  %v2526_v17 = vpop.f32.mrb[4].mxu1 }
 0x15e   : > { %2010 = vst.msk [vmem:[%s484_s14 + $0x10] sm:$0xff] %vm841_vm1, %v2002_v1  ;;  %v2003_v19 = vadd.f32 %v2606_v8, %v2314_v4  ;;  %v1400_v20 = vpop.f32.mrb[5].mxu1 }
 0x15f   : > { %2008 = vst.msk [vmem:[%s484_s14] sm:$0xff] %vm841_vm1, %v2000_v13  ;;  %v2001_v21 = vadd.f32 %v2607_v15, %v2314_v4  ;;  %v2527_v22 = vpop.f32.mrb[6].mxu1 }
 0x160   : > { %2011 = vst.msk [vmem:[%s484_s14 + $0x18] sm:$0xff] %vm841_vm1, %v2003_v19  ;;  %v1403_v24 = vpop.f32.mrb[7].mxu1 }
 0x161   : > { %2009 = vst.msk [vmem:[%s484_s14 + $0x8] sm:$0xff] %vm841_vm1, %v2001_v21  ;;  %v2602_v25 = vpop.f32.mrb[4].mxu0 }
 0x162   : > { %v2608_v28 = vadd.f32 %v2602_v25, %v2526_v17  ;;  %v1970_v30 = vpop.f32.mrb[5].mxu0 }
 0x163   : > { %v2609_v33 = vadd.f32 %v1970_v30, %v1400_v20  ;;  %v2603_v36 = vpop.f32.mrb[6].mxu0 }
 0x164   : > { %v2006_v37 = vadd.f32 %v2608_v28, %v2314_v4  ;;  %v2610_v16 = vadd.f32 %v2603_v36, %v2527_v22  ;;  %v1973_v23 = vpop.f32.mrb[7].mxu0 }
 0x165   : > { %v2004_v39 = vadd.f32 %v2609_v33, %v2314_v4  ;;  %v2611_v26 = vadd.f32 %v1973_v23, %v1403_v24 }
 0x166   : > { %2014 = vst.msk [vmem:[%s484_s14 + $0x30] sm:$0xff] %vm841_vm1, %v2006_v37  ;;  %v2007_v29 = vadd.f32 %v2610_v16, %v2314_v4 }
 0x167   : > { %2012 = vst.msk [vmem:[%s484_s14 + $0x20] sm:$0xff] %vm841_vm1, %v2004_v39  ;;  %v2005_v40 = vadd.f32 %v2611_v26, %v2314_v4 }
 0x168   : > { %2015 = vst.msk [vmem:[%s484_s14 + $0x38] sm:$0xff] %vm841_vm1, %v2007_v29 }
 0x169   : > { %2013 = vst.msk [vmem:[%s484_s14 + $0x28] sm:$0xff] %vm841_vm1, %v2005_v40 }
 0x16a   : > { %2818 = shalt.err (!%p2815_p5)
}
 0x16b   : > { %s2819_s27 = scalar_lea.hbm %s3398_s23, 1024  ;;  %s2823_s14 = scalar_lea.hbm %s3462_s9, 2048 }
 0x16c   : > { %p2820_p6 = scmp.ne.s32.totalorder %s3398_s23, %s2819_s27  ;;  %p2824_p10 = scmp.lt.u32.totalorder %s3398_s23, %s3462_s9 }
 0x16d   : > { %p2825_p11 = scmp.lt.u32.totalorder %s2823_s14, %s2819_s27  ;;  %p2827_p13 = scmp.lt.u32.totalorder %s2819_s27, %s3398_s23 }
 0x16e   : > { %p2821_p7 = pnand %p2820_p6, %p2980_p4 }
 0x16f   : > { %p2826_p12 = por %p2825_p11, %p2824_p10 }
 0x170   : > { %p2822_p9 = pneg %p2821_p7 }
 0x171   : > { %p2828_p0 = por %p2827_p13, %p2826_p12 }
 0x173   : > { %p2829_p1 = pnand %p2828_p0, %p2822_p9 }
 0x175   : > { %2832 = shalt.err (!%p2829_p1)
}
 0x176   : > { %s2888_s22 = smov 128   ;;  %s2889_s0 = smov 8  }
 0x177   : > { %2676 = dma.vmem_to_hbm [thread:$0]  (%p2980_p4), %s3400_s21, 1024, %s3398_s23, %s3407_s10, %s2888_s22, %s2888_s22, %s2889_s0  }
 0x178 PF: > { %p2682_p2 = scmp.ge.s32.totalorder %s2883_s12, 2  ;;  %s2047_s26 = sand.u32 1, %s2863_s28  }
 0x179   : > { %s2048_s25 = scalar_lea.sflag [#allocation3], %s2047_s26 }
 0x17a   : > { %p2679_p3 = pnand %p2682_p2, %p2987_p8 }
 0x17c   : > { %2858 = dma.done.wait (!%p2679_p3), %s2048_s25, 1024  }
 0x17d   : > { %2860 = vsyncadd (!%p2679_p3), %s2048_s25, 4294966272  ;;  %s22_s12 = sadd.s32 1, %s2883_s12   ;;  %s3465_s28 = smov %s2867_s29 }
 0x17e   : > { %p19_p5 = scmp.ge.s32.totalorder %s22_s12, 4   ;;  %s3466_s29 = smov %s2871_s30 }
 0x17f   : > { %s3467_s30 = smov %s2993_s20  ;;  %s3468_s10 = smov %s2879_s11 }
 0x180   : > { %s3469_s11 = smov %s3471_s15  ;;  %21 = sbr.rel (!%p19_p5) target bundleno = 4 (0x4), region = 106 }
 0x187   :  { %2053 = vsyncpa [#allocation3], 1 }
 0x188   :  { %2055 = vsyncpa [#allocation3 + $0x1], 1 }

</bundles_post_ra>
